<compile_context>
chip_gen: v7x
topology: tpu7x:2x2x1
jax: 0.10.0
libtpu: 0.0.40
codegen_flags: <defaults>
</compile_context>

<pallas_src>
import functools

import jax
import jax.numpy as jnp
from jax.experimental import pallas as pl
from jax.experimental.pallas import tpu as pltpu


# ----------------------------------------------------------------------------
# Fused kernel: QKV projection + flash-style attention + output projection.
# Grid: (batch, query_tile, key_tile); key_tile is the reduction axis.
# ----------------------------------------------------------------------------
def _cross_stage_attn_kernel(*refs, num_heads, head_dim, has_bias,
                             compute_dtype):
    if has_bias:
        (xq_ref, xk_ref, wq_ref, wkv_ref, wout_ref, bout_ref, alpha_ref,
         a_ref, y_ref, dots_ref,
         q_scr, k_scr, v_scr, acc_scr, m_scr, l_scr) = refs
    else:
        (xq_ref, xk_ref, wq_ref, wkv_ref, wout_ref, bout_ref,
         y_ref, dots_ref,
         q_scr, k_scr, v_scr, acc_scr, m_scr, l_scr) = refs
        alpha_ref = a_ref = None

    H, d = num_heads, head_dim
    inner = H * d
    cd = compute_dtype
    ki = pl.program_id(2)

    @pl.when(ki == 0)
    def _init():
        # Project this query tile for every head with ONE wide lane-dense MXU
        # matmul (1/sqrt(d) already folded into wq), then emit it into the
        # head-major (H, tq, d) scratch layout used by the batched
        # contractions below.  Runs once per (batch, query-tile).
        q2d = jnp.dot(xq_ref[...], wq_ref[...],
                      preferred_element_type=jnp.float32)        # (tq, H*d)
        for h in range(H):                                       # static; data movement only
            q_scr[h] = q2d[:, h * d:(h + 1) * d].astype(cd)
        m_scr[...] = jnp.full_like(m_scr, -jnp.inf)
        l_scr[...] = jnp.zeros_like(l_scr)
        acc_scr[...] = jnp.zeros_like(acc_scr)

    # K/V projection for this key tile: one wide MXU matmul for every head,
    # emitted into head-major (H, tk, d) scratch.
    kv2d = jnp.dot(xk_ref[...], wkv_ref[...],
                   preferred_element_type=jnp.float32)           # (tk, 2*H*d)
    for h in range(H):
        k_scr[h] = kv2d[:, h * d:(h + 1) * d].astype(cd)
        v_scr[h] = kv2d[:, inner + h * d:inner + (h + 1) * d].astype(cd)

    # Batched per-head scores, all heads in one contraction: (H, tq, tk).
    s = jnp.einsum("hqd,hkd->hqk", q_scr[...], k_scr[...],
                   preferred_element_type=jnp.float32)
    if has_bias:
        s = s + alpha_ref[...] * a_ref[...]
    # dots is a module output: write this lane-dense (H, tq, tk) block.
    dots_ref[...] = s.astype(dots_ref.dtype)

    # Flash-style online softmax across key tiles; statistics stay f32.
    m_prev = m_scr[...]
    m_new = jnp.maximum(m_prev, jnp.max(s, axis=-1, keepdims=True))
    corr = jnp.exp(m_prev - m_new)                               # (H, tq, 1)
    p = jnp.exp(s - m_new)                                       # (H, tq, tk)
    l_scr[...] = corr * l_scr[...] + jnp.sum(p, axis=-1, keepdims=True)
    m_scr[...] = m_new
    pv = jnp.einsum("hqk,hkd->hqd", p.astype(cd), v_scr[...],
                    preferred_element_type=jnp.float32)          # (H, tq, d)
    acc_scr[...] = corr * acc_scr[...] + pv

    @pl.when(ki == pl.num_programs(2) - 1)
    def _finalize():
        # Exact normalization (tight parity with the reference softmax), then
        # fold the head merge straight into the output projection: batched
        # (H, tq, d) x (H, d, dim) contraction, summed over heads.  Merged
        # (tq, H*d) activations never materialize; y is written lane-dense.
        out_h = acc_scr[...] / l_scr[...]                        # (H, tq, d) f32
        y_h = jnp.einsum("hqd,hdD->hqD", out_h.astype(cd), wout_ref[...],
                         preferred_element_type=jnp.float32)     # (H, tq, dim)
        y = y_h[0]
        for h in range(1, H):                                    # unrolled head-sum (H small)
            y = y + y_h[h]
        y_ref[...] = (y + bout_ref[...]).astype(y_ref.dtype)


def _pick_tile(n, candidates):
    for c in candidates:
        if n % c == 0:
            return c
    return n  # small / irregular axis: a single tile spans the full extent


def cross_stage_self_attention(x, params, A=None, *, num_heads, head_dim,
                               q_tile=None, k_tile=None,
                               compute_dtype=jnp.bfloat16,
                               dots_dtype=jnp.float32,
                               vmem_limit_bytes=64 * 1024 * 1024):
    """Pallas implementation of CrossStageSelfAttention.forward.

    Returns (to_out(out), dots) just like the PyTorch module.
    """
    B, N, dim = x.shape
    H, d = num_heads, head_dim
    inner = H * d
    scale = float(head_dim) ** -0.5

    # 256/512-multiple tiles keep the 256x256 MXU (v6e/v7x) full; 128 is fine
    # on v5e.  Small N degenerates to a single full-extent tile.
    tq = q_tile if q_tile is not None else _pick_tile(N, (512, 256, 128))
    tk = k_tile if k_tile is not None else _pick_tile(N, (256, 128))
    assert N % tq == 0 and N % tk == 0, "tiles must divide the sequence length"
    n_q, n_k = N // tq, N // tk

    w_qkv = params["w_qkv"]          # (3*inner, dim)  -- torch Linear weight
    alpha = params["alpha"]          # (1, H, 1, 1)
    w_out = params["w_out"]          # (dim, inner)
    b_out = params["b_out"]          # (dim,)

    # One-time parameter transforms (scale folded into the Q columns).
    wq = (w_qkv[:inner].T.astype(jnp.float32) * scale).astype(compute_dtype)  # (dim, inner)
    wkv = w_qkv[inner:].T.astype(compute_dtype)                               # (dim, 2*inner)
    wout = w_out.T.reshape(H, d, dim).astype(compute_dtype)                   # (H, d, dim)
    bout = b_out.reshape(1, dim).astype(jnp.float32)
    x_c = x.astype(compute_dtype)

    has_bias = A is not None
    kernel = functools.partial(
        _cross_stage_attn_kernel, num_heads=H, head_dim=d,
        has_bias=has_bias, compute_dtype=compute_dtype)

    in_specs = [
        pl.BlockSpec((None, tq, dim), lambda b, qi, ki: (b, qi, 0)),   # x (query rows)
        pl.BlockSpec((None, tk, dim), lambda b, qi, ki: (b, ki, 0)),   # x (key rows)
        pl.BlockSpec((dim, inner), lambda b, qi, ki: (0, 0)),          # Wq (scale folded)
        pl.BlockSpec((dim, 2 * inner), lambda b, qi, ki: (0, 0)),      # [Wk | Wv]
        pl.BlockSpec((H, d, dim), lambda b, qi, ki: (0, 0, 0)),        # W_out^T as (H, d, dim)
        pl.BlockSpec((1, dim), lambda b, qi, ki: (0, 0)),              # b_out
    ]
    args = [x_c, x_c, wq, wkv, wout, bout]
    if has_bias:
        in_specs.append(pl.BlockSpec((H, 1, 1), lambda b, qi, ki: (0, 0, 0)))            # alpha
        in_specs.append(pl.BlockSpec((None, H, tq, tk), lambda b, qi, ki: (b, 0, qi, ki)))  # A
        args.append(alpha.reshape(H, 1, 1).astype(jnp.float32))
        args.append(A.astype(jnp.float32))

    y, dots = pl.pallas_call(
        kernel,
        grid=(B, n_q, n_k),
        in_specs=in_specs,
        out_specs=[
            pl.BlockSpec((None, tq, dim), lambda b, qi, ki: (b, qi, 0)),       # y (accumulator)
            pl.BlockSpec((None, H, tq, tk), lambda b, qi, ki: (b, 0, qi, ki)),  # dots
        ],
        out_shape=[
            jax.ShapeDtypeStruct((B, N, dim), jnp.float32),
            jax.ShapeDtypeStruct((B, H, N, N), dots_dtype),
        ],
        scratch_shapes=[
            pltpu.VMEM((H, tq, d), compute_dtype),   # q (head-major)
            pltpu.VMEM((H, tk, d), compute_dtype),   # k (head-major)
            pltpu.VMEM((H, tk, d), compute_dtype),   # v (head-major)
            pltpu.VMEM((H, tq, d), jnp.float32),     # output accumulator
            pltpu.VMEM((H, tq, 1), jnp.float32),     # running max
            pltpu.VMEM((H, tq, 1), jnp.float32),     # running sum
        ],
        compiler_params=pltpu.CompilerParams(
            dimension_semantics=("parallel", "parallel", "arbitrary"),
            vmem_limit_bytes=vmem_limit_bytes),
    )(*args)

    return y, dots


# ----------------------------------------------------------------------------
# Pure-JAX reference (mirrors the PyTorch forward) for the correctness check.
# ----------------------------------------------------------------------------
def _ref_forward(x, params, A, num_heads, head_dim):
    inner = num_heads * head_dim
    scale = float(head_dim) ** -0.5
    qkv = x @ params["w_qkv"].T
    q, k, v = jnp.split(qkv, 3, axis=-1)

    def to_heads(t):
        b, n, _ = t.shape
        return t.reshape(b, n, num_heads, head_dim).transpose(0, 2, 1, 3)

    q, k, v = map(to_heads, (q, k, v))
    dots = jnp.einsum("bhnd,bhmd->bhnm", q, k) * scale
    if A is not None:
        dots = dots + params["alpha"] * A
    attn = jax.nn.softmax(dots, axis=-1)
    out = jnp.einsum("bhnm,bhmd->bhnd", attn, v)
    b, _, n, _ = out.shape
    out = out.transpose(0, 2, 1, 3).reshape(b, n, inner)
    out = out @ params["w_out"].T + params["b_out"]
    return out, dots


if __name__ == "__main__":
    def run_case(B, N, dim, num_heads, head_dim, q_tile=None, k_tile=None):
        inner = num_heads * head_dim
        key = jax.random.PRNGKey(0)
        k_x, k_a, k_qkv, k_alpha, k_wo, k_bo = jax.random.split(key, 6)

        x = jax.random.normal(k_x, (B, N, dim), jnp.float32)
        A = jax.random.normal(k_a, (B, num_heads, N, N), jnp.float32)
        params = {
            "w_qkv": jax.random.normal(k_qkv, (3 * inner, dim), jnp.float32) * 0.02,
            "alpha": jax.random.truncated_normal(
                k_alpha, -2.0, 2.0, (1, num_heads, 1, 1), jnp.float32) * 0.02,
            "w_out": jax.random.normal(k_wo, (dim, inner), jnp.float32) * 0.02,
            "b_out": jax.random.normal(k_bo, (dim,), jnp.float32) * 0.02,
        }

        ref_out, ref_dots = _ref_forward(x, params, A, num_heads, head_dim)
        ref_out0, ref_dots0 = _ref_forward(x, params, None, num_heads, head_dim)

        # f32 operands: tight parity with the reference.
        out, dots = cross_stage_self_attention(
            x, params, A, num_heads=num_heads, head_dim=head_dim,
            q_tile=q_tile, k_tile=k_tile, compute_dtype=jnp.float32)
        jax.block_until_ready((out, dots))
        assert jnp.allclose(dots, ref_dots, atol=1e-4, rtol=1e-4)
        assert jnp.allclose(out, ref_out, atol=1e-3, rtol=1e-3)

        # A=None path (separate kernel variant, no zero-A tensor materialized).
        out0, dots0 = cross_stage_self_attention(
            x, params, None, num_heads=num_heads, head_dim=head_dim,
            q_tile=q_tile, k_tile=k_tile, compute_dtype=jnp.float32)
        jax.block_until_ready((out0, dots0))
        assert jnp.allclose(dots0, ref_dots0, atol=1e-4, rtol=1e-4)
        assert jnp.allclose(out0, ref_out0, atol=1e-3, rtol=1e-3)

        # Default bf16 MXU operands (f32 accumulation): looser tolerance.
        out_bf, dots_bf = cross_stage_self_attention(
            x, params, A, num_heads=num_heads, head_dim=head_dim,
            q_tile=q_tile, k_tile=k_tile)
        jax.block_until_ready((out_bf, dots_bf))
        assert jnp.allclose(dots_bf, ref_dots, atol=2e-2, rtol=2e-2)
        assert jnp.allclose(out_bf, ref_out, atol=2e-2, rtol=2e-2)

    # Small shape: tiles degenerate to the full extents (single-tile grid).
    run_case(B=2, N=8, dim=32, num_heads=4, head_dim=16)
    # Larger shape forcing a 2x2 query/key tile grid with 128-aligned blocks,
    # exercising the online-softmax accumulation across key tiles.
    run_case(B=2, N=256, dim=32, num_heads=4, head_dim=16,
             q_tile=128, k_tile=128)

    print("KERNEL_OK")
</pallas_src>

<mosaic_0001>
module attributes {stable_mosaic.version = 11 : i64} {
  func.func @_cross_stage_attn_kernel(%arg0: i32, %arg1: i32, %arg2: i32, %arg3: memref<1x8x32xf32, #tpu.memory_space<vmem>>, %arg4: memref<1x8x32xf32, #tpu.memory_space<vmem>>, %arg5: memref<32x64xf32, #tpu.memory_space<vmem>>, %arg6: memref<32x128xf32, #tpu.memory_space<vmem>>, %arg7: memref<4x16x32xf32, #tpu.memory_space<vmem>>, %arg8: memref<1x32xf32, #tpu.memory_space<vmem>>, %arg9: memref<4x1x1xf32, #tpu.memory_space<vmem>>, %arg10: memref<1x4x8x8xf32, #tpu.memory_space<vmem>>, %arg11: memref<1x8x32xf32, #tpu.memory_space<vmem>>, %arg12: memref<1x4x8x8xf32, #tpu.memory_space<vmem>>, %arg13: memref<4x8x16xf32, #tpu.memory_space<vmem>>, %arg14: memref<4x8x16xf32, #tpu.memory_space<vmem>>, %arg15: memref<4x8x16xf32, #tpu.memory_space<vmem>>, %arg16: memref<4x8x16xf32, #tpu.memory_space<vmem>>, %arg17: memref<4x8x1xf32, #tpu.memory_space<vmem>>, %arg18: memref<4x8x1xf32, #tpu.memory_space<vmem>>) attributes {dimension_semantics = [#tpu.dimension_semantics<parallel>, #tpu.dimension_semantics<parallel>, #tpu.dimension_semantics<arbitrary>], iteration_bounds = array<i64: 2, 1, 1>, scalar_prefetch = 0 : i64, scratch_operands = 6 : i64, tpu.core_type = #tpu.core_type<tc>, window_params = [{transform_indices = @transform_0, window_bounds = array<i64: 1, 8, 32>}, {transform_indices = @transform_1, window_bounds = array<i64: 1, 8, 32>}, {pipeline_mode = #tpu.pipeline_mode<synchronous>, transform_indices = @transform_2, window_bounds = array<i64: 32, 64>}, {pipeline_mode = #tpu.pipeline_mode<synchronous>, transform_indices = @transform_3, window_bounds = array<i64: 32, 128>}, {pipeline_mode = #tpu.pipeline_mode<synchronous>, transform_indices = @transform_4, window_bounds = array<i64: 4, 16, 32>}, {pipeline_mode = #tpu.pipeline_mode<synchronous>, transform_indices = @transform_5, window_bounds = array<i64: 1, 32>}, {pipeline_mode = #tpu.pipeline_mode<synchronous>, transform_indices = @transform_6, window_bounds = array<i64: 4, 1, 1>}, {transform_indices = @transform_7, window_bounds = array<i64: 1, 4, 8, 8>}, {transform_indices = @transform_8, window_bounds = array<i64: 1, 8, 32>}, {transform_indices = @transform_9, window_bounds = array<i64: 1, 4, 8, 8>}]} {
    %c0_i32 = arith.constant 0 : i32
    %0 = arith.cmpi eq, %arg2, %c0_i32 : i32
    %1 = arith.extui %0 : i1 to i32
    %c0_i32_0 = arith.constant 0 : i32
    %2 = arith.cmpi ne, %1, %c0_i32_0 : i32
    scf.if %2 {
      %c0_70 = arith.constant 0 : index
      %c0_71 = arith.constant 0 : index
      %c0_72 = arith.constant 0 : index
      %77 = vector.load %arg3[%c0_70, %c0_71, %c0_72] : memref<1x8x32xf32, #tpu.memory_space<vmem>>, vector<1x8x32xf32>
      %78 = vector.shape_cast %77 : vector<1x8x32xf32> to vector<8x32xf32>
      %c0_73 = arith.constant 0 : index
      %c0_74 = arith.constant 0 : index
      %79 = vector.load %arg5[%c0_73, %c0_74] : memref<32x64xf32, #tpu.memory_space<vmem>>, vector<32x64xf32>
      %cst_75 = arith.constant dense<0.000000e+00> : vector<8x64xf32>
      %80 = tpu.matmul %78, %79, %cst_75 {dimension_numbers = #tpu.dot_dimension_numbers<[1], [0], [0], [1], [0, 0, 1, 1], [], []>} : vector<8x32xf32>, vector<32x64xf32>, vector<8x64xf32> -> vector<8x64xf32>
      %81 = vector.extract_strided_slice %80 {offsets = [0, 0], sizes = [8, 16], strides = [1, 1]} : vector<8x64xf32> to vector<8x16xf32>
      %c0_76 = arith.constant 0 : index
      %c0_77 = arith.constant 0 : index
      %c0_78 = arith.constant 0 : index
      %82 = vector.load %arg13[%c0_76, %c0_77, %c0_78] : memref<4x8x16xf32, #tpu.memory_space<vmem>>, vector<1x8x16xf32>
      %83 = vector.shape_cast %82 : vector<1x8x16xf32> to vector<8x16xf32>
      %84 = vector.shape_cast %81 : vector<8x16xf32> to vector<1x8x16xf32>
      tpu.vector_store %arg13[%c0_76, %c0_77, %c0_78], %84 {strides = array<i32>} : memref<4x8x16xf32, #tpu.memory_space<vmem>>, vector<1x8x16xf32>,
      %85 = vector.extract_strided_slice %80 {offsets = [0, 16], sizes = [8, 16], strides = [1, 1]} : vector<8x64xf32> to vector<8x16xf32>
      %c1_79 = arith.constant 1 : index
      %c0_80 = arith.constant 0 : index
      %c0_81 = arith.constant 0 : index
      %86 = vector.load %arg13[%c1_79, %c0_80, %c0_81] : memref<4x8x16xf32, #tpu.memory_space<vmem>>, vector<1x8x16xf32>
      %87 = vector.shape_cast %86 : vector<1x8x16xf32> to vector<8x16xf32>
      %88 = vector.shape_cast %85 : vector<8x16xf32> to vector<1x8x16xf32>
      tpu.vector_store %arg13[%c1_79, %c0_80, %c0_81], %88 {strides = array<i32>} : memref<4x8x16xf32, #tpu.memory_space<vmem>>, vector<1x8x16xf32>,
      %89 = vector.extract_strided_slice %80 {offsets = [0, 32], sizes = [8, 16], strides = [1, 1]} : vector<8x64xf32> to vector<8x16xf32>
      %c2_82 = arith.constant 2 : index
      %c0_83 = arith.constant 0 : index
      %c0_84 = arith.constant 0 : index
      %90 = vector.load %arg13[%c2_82, %c0_83, %c0_84] : memref<4x8x16xf32, #tpu.memory_space<vmem>>, vector<1x8x16xf32>
      %91 = vector.shape_cast %90 : vector<1x8x16xf32> to vector<8x16xf32>
      %92 = vector.shape_cast %89 : vector<8x16xf32> to vector<1x8x16xf32>
      tpu.vector_store %arg13[%c2_82, %c0_83, %c0_84], %92 {strides = array<i32>} : memref<4x8x16xf32, #tpu.memory_space<vmem>>, vector<1x8x16xf32>,
      %93 = vector.extract_strided_slice %80 {offsets = [0, 48], sizes = [8, 16], strides = [1, 1]} : vector<8x64xf32> to vector<8x16xf32>
      %c3_85 = arith.constant 3 : index
      %c0_86 = arith.constant 0 : index
      %c0_87 = arith.constant 0 : index
      %94 = vector.load %arg13[%c3_85, %c0_86, %c0_87] : memref<4x8x16xf32, #tpu.memory_space<vmem>>, vector<1x8x16xf32>
      %95 = vector.shape_cast %94 : vector<1x8x16xf32> to vector<8x16xf32>
      %96 = vector.shape_cast %93 : vector<8x16xf32> to vector<1x8x16xf32>
      tpu.vector_store %arg13[%c3_85, %c0_86, %c0_87], %96 {strides = array<i32>} : memref<4x8x16xf32, #tpu.memory_space<vmem>>, vector<1x8x16xf32>,
      %cst_88 = arith.constant 0xFF800000 : f32
      %97 = vector.broadcast %cst_88 : f32 to vector<4x8x1xf32>
      %c0_89 = arith.constant 0 : index
      %c0_90 = arith.constant 0 : index
      %c0_91 = arith.constant 0 : index
      %98 = vector.load %arg17[%c0_89, %c0_90, %c0_91] : memref<4x8x1xf32, #tpu.memory_space<vmem>>, vector<4x8x1xf32>
      tpu.vector_store %arg17[%c0_89, %c0_90, %c0_91], %97 {strides = array<i32>} : memref<4x8x1xf32, #tpu.memory_space<vmem>>, vector<4x8x1xf32>,
      %cst_92 = arith.constant 0.000000e+00 : f32
      %99 = vector.broadcast %cst_92 : f32 to vector<4x8x1xf32>
      %c0_93 = arith.constant 0 : index
      %c0_94 = arith.constant 0 : index
      %c0_95 = arith.constant 0 : index
      %100 = vector.load %arg18[%c0_93, %c0_94, %c0_95] : memref<4x8x1xf32, #tpu.memory_space<vmem>>, vector<4x8x1xf32>
      tpu.vector_store %arg18[%c0_93, %c0_94, %c0_95], %99 {strides = array<i32>} : memref<4x8x1xf32, #tpu.memory_space<vmem>>, vector<4x8x1xf32>,
      %cst_96 = arith.constant 0.000000e+00 : f32
      %101 = vector.broadcast %cst_96 : f32 to vector<4x8x16xf32>
      %c0_97 = arith.constant 0 : index
      %c0_98 = arith.constant 0 : index
      %c0_99 = arith.constant 0 : index
      %102 = vector.load %arg16[%c0_97, %c0_98, %c0_99] : memref<4x8x16xf32, #tpu.memory_space<vmem>>, vector<4x8x16xf32>
      tpu.vector_store %arg16[%c0_97, %c0_98, %c0_99], %101 {strides = array<i32>} : memref<4x8x16xf32, #tpu.memory_space<vmem>>, vector<4x8x16xf32>,
    } else {
    }
    %c0 = arith.constant 0 : index
    %c0_1 = arith.constant 0 : index
    %c0_2 = arith.constant 0 : index
    %3 = vector.load %arg4[%c0, %c0_1, %c0_2] : memref<1x8x32xf32, #tpu.memory_space<vmem>>, vector<1x8x32xf32>
    %4 = vector.shape_cast %3 : vector<1x8x32xf32> to vector<8x32xf32>
    %c0_3 = arith.constant 0 : index
    %c0_4 = arith.constant 0 : index
    %5 = vector.load %arg6[%c0_3, %c0_4] : memref<32x128xf32, #tpu.memory_space<vmem>>, vector<32x128xf32>
    %cst = arith.constant dense<0.000000e+00> : vector<8x128xf32>
    %6 = tpu.matmul %4, %5, %cst {dimension_numbers = #tpu.dot_dimension_numbers<[1], [0], [0], [1], [0, 0, 1, 1], [], []>} : vector<8x32xf32>, vector<32x128xf32>, vector<8x128xf32> -> vector<8x128xf32>
    %7 = vector.extract_strided_slice %6 {offsets = [0, 0], sizes = [8, 16], strides = [1, 1]} : vector<8x128xf32> to vector<8x16xf32>
    %c0_5 = arith.constant 0 : index
    %c0_6 = arith.constant 0 : index
    %c0_7 = arith.constant 0 : index
    %8 = vector.load %arg14[%c0_5, %c0_6, %c0_7] : memref<4x8x16xf32, #tpu.memory_space<vmem>>, vector<1x8x16xf32>
    %9 = vector.shape_cast %8 : vector<1x8x16xf32> to vector<8x16xf32>
    %10 = vector.shape_cast %7 : vector<8x16xf32> to vector<1x8x16xf32>
    tpu.vector_store %arg14[%c0_5, %c0_6, %c0_7], %10 {strides = array<i32>} : memref<4x8x16xf32, #tpu.memory_space<vmem>>, vector<1x8x16xf32>,
    %11 = vector.extract_strided_slice %6 {offsets = [0, 64], sizes = [8, 16], strides = [1, 1]} : vector<8x128xf32> to vector<8x16xf32>
    %c0_8 = arith.constant 0 : index
    %c0_9 = arith.constant 0 : index
    %c0_10 = arith.constant 0 : index
    %12 = vector.load %arg15[%c0_8, %c0_9, %c0_10] : memref<4x8x16xf32, #tpu.memory_space<vmem>>, vector<1x8x16xf32>
    %13 = vector.shape_cast %12 : vector<1x8x16xf32> to vector<8x16xf32>
    %14 = vector.shape_cast %11 : vector<8x16xf32> to vector<1x8x16xf32>
    tpu.vector_store %arg15[%c0_8, %c0_9, %c0_10], %14 {strides = array<i32>} : memref<4x8x16xf32, #tpu.memory_space<vmem>>, vector<1x8x16xf32>,
    %15 = vector.extract_strided_slice %6 {offsets = [0, 16], sizes = [8, 16], strides = [1, 1]} : vector<8x128xf32> to vector<8x16xf32>
    %c1 = arith.constant 1 : index
    %c0_11 = arith.constant 0 : index
    %c0_12 = arith.constant 0 : index
    %16 = vector.load %arg14[%c1, %c0_11, %c0_12] : memref<4x8x16xf32, #tpu.memory_space<vmem>>, vector<1x8x16xf32>
    %17 = vector.shape_cast %16 : vector<1x8x16xf32> to vector<8x16xf32>
    %18 = vector.shape_cast %15 : vector<8x16xf32> to vector<1x8x16xf32>
    tpu.vector_store %arg14[%c1, %c0_11, %c0_12], %18 {strides = array<i32>} : memref<4x8x16xf32, #tpu.memory_space<vmem>>, vector<1x8x16xf32>,
    %19 = vector.extract_strided_slice %6 {offsets = [0, 80], sizes = [8, 16], strides = [1, 1]} : vector<8x128xf32> to vector<8x16xf32>
    %c1_13 = arith.constant 1 : index
    %c0_14 = arith.constant 0 : index
    %c0_15 = arith.constant 0 : index
    %20 = vector.load %arg15[%c1_13, %c0_14, %c0_15] : memref<4x8x16xf32, #tpu.memory_space<vmem>>, vector<1x8x16xf32>
    %21 = vector.shape_cast %20 : vector<1x8x16xf32> to vector<8x16xf32>
    %22 = vector.shape_cast %19 : vector<8x16xf32> to vector<1x8x16xf32>
    tpu.vector_store %arg15[%c1_13, %c0_14, %c0_15], %22 {strides = array<i32>} : memref<4x8x16xf32, #tpu.memory_space<vmem>>, vector<1x8x16xf32>,
    %23 = vector.extract_strided_slice %6 {offsets = [0, 32], sizes = [8, 16], strides = [1, 1]} : vector<8x128xf32> to vector<8x16xf32>
    %c2 = arith.constant 2 : index
    %c0_16 = arith.constant 0 : index
    %c0_17 = arith.constant 0 : index
    %24 = vector.load %arg14[%c2, %c0_16, %c0_17] : memref<4x8x16xf32, #tpu.memory_space<vmem>>, vector<1x8x16xf32>
    %25 = vector.shape_cast %24 : vector<1x8x16xf32> to vector<8x16xf32>
    %26 = vector.shape_cast %23 : vector<8x16xf32> to vector<1x8x16xf32>
    tpu.vector_store %arg14[%c2, %c0_16, %c0_17], %26 {strides = array<i32>} : memref<4x8x16xf32, #tpu.memory_space<vmem>>, vector<1x8x16xf32>,
    %27 = vector.extract_strided_slice %6 {offsets = [0, 96], sizes = [8, 16], strides = [1, 1]} : vector<8x128xf32> to vector<8x16xf32>
    %c2_18 = arith.constant 2 : index
    %c0_19 = arith.constant 0 : index
    %c0_20 = arith.constant 0 : index
    %28 = vector.load %arg15[%c2_18, %c0_19, %c0_20] : memref<4x8x16xf32, #tpu.memory_space<vmem>>, vector<1x8x16xf32>
    %29 = vector.shape_cast %28 : vector<1x8x16xf32> to vector<8x16xf32>
    %30 = vector.shape_cast %27 : vector<8x16xf32> to vector<1x8x16xf32>
    tpu.vector_store %arg15[%c2_18, %c0_19, %c0_20], %30 {strides = array<i32>} : memref<4x8x16xf32, #tpu.memory_space<vmem>>, vector<1x8x16xf32>,
    %31 = vector.extract_strided_slice %6 {offsets = [0, 48], sizes = [8, 16], strides = [1, 1]} : vector<8x128xf32> to vector<8x16xf32>
    %c3 = arith.constant 3 : index
    %c0_21 = arith.constant 0 : index
    %c0_22 = arith.constant 0 : index
    %32 = vector.load %arg14[%c3, %c0_21, %c0_22] : memref<4x8x16xf32, #tpu.memory_space<vmem>>, vector<1x8x16xf32>
    %33 = vector.shape_cast %32 : vector<1x8x16xf32> to vector<8x16xf32>
    %34 = vector.shape_cast %31 : vector<8x16xf32> to vector<1x8x16xf32>
    tpu.vector_store %arg14[%c3, %c0_21, %c0_22], %34 {strides = array<i32>} : memref<4x8x16xf32, #tpu.memory_space<vmem>>, vector<1x8x16xf32>,
    %35 = vector.extract_strided_slice %6 {offsets = [0, 112], sizes = [8, 16], strides = [1, 1]} : vector<8x128xf32> to vector<8x16xf32>
    %c3_23 = arith.constant 3 : index
    %c0_24 = arith.constant 0 : index
    %c0_25 = arith.constant 0 : index
    %36 = vector.load %arg15[%c3_23, %c0_24, %c0_25] : memref<4x8x16xf32, #tpu.memory_space<vmem>>, vector<1x8x16xf32>
    %37 = vector.shape_cast %36 : vector<1x8x16xf32> to vector<8x16xf32>
    %38 = vector.shape_cast %35 : vector<8x16xf32> to vector<1x8x16xf32>
    tpu.vector_store %arg15[%c3_23, %c0_24, %c0_25], %38 {strides = array<i32>} : memref<4x8x16xf32, #tpu.memory_space<vmem>>, vector<1x8x16xf32>,
    %c0_26 = arith.constant 0 : index
    %c0_27 = arith.constant 0 : index
    %c0_28 = arith.constant 0 : index
    %39 = vector.load %arg13[%c0_26, %c0_27, %c0_28] : memref<4x8x16xf32, #tpu.memory_space<vmem>>, vector<4x8x16xf32>
    %c0_29 = arith.constant 0 : index
    %c0_30 = arith.constant 0 : index
    %c0_31 = arith.constant 0 : index
    %40 = vector.load %arg14[%c0_29, %c0_30, %c0_31] : memref<4x8x16xf32, #tpu.memory_space<vmem>>, vector<4x8x16xf32>
    "tpu.trace_start"() <{level = 10 : i32, message = "hqd,hkd->hqk"}> : () -> ()
    %cst_32 = arith.constant dense<0.000000e+00> : vector<4x8x8xf32>
    %41 = tpu.matmul %39, %40, %cst_32 {dimension_numbers = #tpu.dot_dimension_numbers<[2], [2], [1], [1], [0, 0, 0, 1, 1, 1], [0], [0]>} : vector<4x8x16xf32>, vector<4x8x16xf32>, vector<4x8x8xf32> -> vector<4x8x8xf32>
    "tpu.trace_stop"() : () -> ()
    %c0_33 = arith.constant 0 : index
    %c0_34 = arith.constant 0 : index
    %c0_35 = arith.constant 0 : index
    %42 = vector.load %arg9[%c0_33, %c0_34, %c0_35] : memref<4x1x1xf32, #tpu.memory_space<vmem>>, vector<4x1x1xf32>
    %c0_36 = arith.constant 0 : index
    %c0_37 = arith.constant 0 : index
    %c0_38 = arith.constant 0 : index
    %c0_39 = arith.constant 0 : index
    %43 = vector.load %arg10[%c0_36, %c0_37, %c0_38, %c0_39] : memref<1x4x8x8xf32, #tpu.memory_space<vmem>>, vector<1x4x8x8xf32>
    %44 = vector.shape_cast %43 : vector<1x4x8x8xf32> to vector<4x8x8xf32>
    %45 = vector.broadcast %42 : vector<4x1x1xf32> to vector<4x8x8xf32>
    %46 = arith.mulf %45, %44 : vector<4x8x8xf32>
    %47 = arith.addf %41, %46 : vector<4x8x8xf32>
    %c0_40 = arith.constant 0 : index
    %c0_41 = arith.constant 0 : index
    %c0_42 = arith.constant 0 : index
    %c0_43 = arith.constant 0 : index
    %48 = vector.load %arg12[%c0_40, %c0_41, %c0_42, %c0_43] : memref<1x4x8x8xf32, #tpu.memory_space<vmem>>, vector<1x4x8x8xf32>
    %49 = vector.shape_cast %48 : vector<1x4x8x8xf32> to vector<4x8x8xf32>
    %50 = vector.shape_cast %47 : vector<4x8x8xf32> to vector<1x4x8x8xf32>
    tpu.vector_store %arg12[%c0_40, %c0_41, %c0_42, %c0_43], %50 {strides = array<i32>} : memref<1x4x8x8xf32, #tpu.memory_space<vmem>>, vector<1x4x8x8xf32>,
    %c0_44 = arith.constant 0 : index
    %c0_45 = arith.constant 0 : index
    %c0_46 = arith.constant 0 : index
    %51 = vector.load %arg17[%c0_44, %c0_45, %c0_46] : memref<4x8x1xf32, #tpu.memory_space<vmem>>, vector<4x8x1xf32>
    %cst_47 = arith.constant dense<0xFF800000> : vector<4x8xf32>
    %52 = vector.multi_reduction <maximumf>, %47, %cst_47 [2] : vector<4x8x8xf32> to vector<4x8xf32>
    %53 = vector.shape_cast %52 : vector<4x8xf32> to vector<4x8x1xf32>
    %54 = arith.maximumf %51, %53 : vector<4x8x1xf32>
    %55 = arith.subf %51, %54 : vector<4x8x1xf32>
    %56 = math.exp %55 : vector<4x8x1xf32>
    %57 = vector.broadcast %54 : vector<4x8x1xf32> to vector<4x8x8xf32>
    %58 = arith.subf %47, %57 : vector<4x8x8xf32>
    %59 = math.exp %58 : vector<4x8x8xf32>
    %c0_48 = arith.constant 0 : index
    %c0_49 = arith.constant 0 : index
    %c0_50 = arith.constant 0 : index
    %60 = vector.load %arg18[%c0_48, %c0_49, %c0_50] : memref<4x8x1xf32, #tpu.memory_space<vmem>>, vector<4x8x1xf32>
    %61 = arith.mulf %56, %60 : vector<4x8x1xf32>
    %cst_51 = arith.constant dense<0.000000e+00> : vector<4x8xf32>
    %62 = vector.multi_reduction <add>, %59, %cst_51 [2] : vector<4x8x8xf32> to vector<4x8xf32>
    %63 = vector.shape_cast %62 : vector<4x8xf32> to vector<4x8x1xf32>
    %64 = arith.addf %61, %63 : vector<4x8x1xf32>
    %c0_52 = arith.constant 0 : index
    %c0_53 = arith.constant 0 : index
    %c0_54 = arith.constant 0 : index
    %65 = vector.load %arg18[%c0_52, %c0_53, %c0_54] : memref<4x8x1xf32, #tpu.memory_space<vmem>>, vector<4x8x1xf32>
    tpu.vector_store %arg18[%c0_52, %c0_53, %c0_54], %64 {strides = array<i32>} : memref<4x8x1xf32, #tpu.memory_space<vmem>>, vector<4x8x1xf32>,
    %c0_55 = arith.constant 0 : index
    %c0_56 = arith.constant 0 : index
    %c0_57 = arith.constant 0 : index
    %66 = vector.load %arg17[%c0_55, %c0_56, %c0_57] : memref<4x8x1xf32, #tpu.memory_space<vmem>>, vector<4x8x1xf32>
    tpu.vector_store %arg17[%c0_55, %c0_56, %c0_57], %54 {strides = array<i32>} : memref<4x8x1xf32, #tpu.memory_space<vmem>>, vector<4x8x1xf32>,
    %c0_58 = arith.constant 0 : index
    %c0_59 = arith.constant 0 : index
    %c0_60 = arith.constant 0 : index
    %67 = vector.load %arg15[%c0_58, %c0_59, %c0_60] : memref<4x8x16xf32, #tpu.memory_space<vmem>>, vector<4x8x16xf32>
    "tpu.trace_start"() <{level = 10 : i32, message = "hqk,hkd->hqd"}> : () -> ()
    %cst_61 = arith.constant dense<0.000000e+00> : vector<4x8x16xf32>
    %68 = tpu.matmul %59, %67, %cst_61 {dimension_numbers = #tpu.dot_dimension_numbers<[2], [1], [1], [2], [0, 0, 0, 1, 1, 2], [0], [0]>} : vector<4x8x8xf32>, vector<4x8x16xf32>, vector<4x8x16xf32> -> vector<4x8x16xf32>
    "tpu.trace_stop"() : () -> ()
    %c0_62 = arith.constant 0 : index
    %c0_63 = arith.constant 0 : index
    %c0_64 = arith.constant 0 : index
    %69 = vector.load %arg16[%c0_62, %c0_63, %c0_64] : memref<4x8x16xf32, #tpu.memory_space<vmem>>, vector<4x8x16xf32>
    %70 = vector.broadcast %56 : vector<4x8x1xf32> to vector<4x8x16xf32>
    %71 = arith.mulf %70, %69 : vector<4x8x16xf32>
    %72 = arith.addf %71, %68 : vector<4x8x16xf32>
    %c0_65 = arith.constant 0 : index
    %c0_66 = arith.constant 0 : index
    %c0_67 = arith.constant 0 : index
    %73 = vector.load %arg16[%c0_65, %c0_66, %c0_67] : memref<4x8x16xf32, #tpu.memory_space<vmem>>, vector<4x8x16xf32>
    tpu.vector_store %arg16[%c0_65, %c0_66, %c0_67], %72 {strides = array<i32>} : memref<4x8x16xf32, #tpu.memory_space<vmem>>, vector<4x8x16xf32>,
    %c0_i32_68 = arith.constant 0 : i32
    %74 = arith.cmpi eq, %arg2, %c0_i32_68 : i32
    %75 = arith.extui %74 : i1 to i32
    %c0_i32_69 = arith.constant 0 : i32
    %76 = arith.cmpi ne, %75, %c0_i32_69 : i32
    scf.if %76 {
      %c0_70 = arith.constant 0 : index
      %c0_71 = arith.constant 0 : index
      %c0_72 = arith.constant 0 : index
      %77 = vector.load %arg16[%c0_70, %c0_71, %c0_72] : memref<4x8x16xf32, #tpu.memory_space<vmem>>, vector<4x8x16xf32>
      %c0_73 = arith.constant 0 : index
      %c0_74 = arith.constant 0 : index
      %c0_75 = arith.constant 0 : index
      %78 = vector.load %arg18[%c0_73, %c0_74, %c0_75] : memref<4x8x1xf32, #tpu.memory_space<vmem>>, vector<4x8x1xf32>
      %79 = vector.broadcast %78 : vector<4x8x1xf32> to vector<4x8x16xf32>
      %80 = arith.divf %77, %79 : vector<4x8x16xf32>
      %c0_76 = arith.constant 0 : index
      %c0_77 = arith.constant 0 : index
      %c0_78 = arith.constant 0 : index
      %81 = vector.load %arg7[%c0_76, %c0_77, %c0_78] : memref<4x16x32xf32, #tpu.memory_space<vmem>>, vector<4x16x32xf32>
      "tpu.trace_start"() <{level = 10 : i32, message = "hqd,hdD->hqD"}> : () -> ()
      %cst_79 = arith.constant dense<0.000000e+00> : vector<4x8x32xf32>
      %82 = tpu.matmul %80, %81, %cst_79 {dimension_numbers = #tpu.dot_dimension_numbers<[2], [1], [1], [2], [0, 0, 0, 1, 1, 2], [0], [0]>} : vector<4x8x16xf32>, vector<4x16x32xf32>, vector<4x8x32xf32> -> vector<4x8x32xf32>
      "tpu.trace_stop"() : () -> ()
      %83 = vector.extract_strided_slice %82 {offsets = [0, 0, 0], sizes = [1, 8, 32], strides = [1, 1, 1]} : vector<4x8x32xf32> to vector<1x8x32xf32>
      %84 = vector.shape_cast %83 : vector<1x8x32xf32> to vector<8x32xf32>
      %85 = vector.extract_strided_slice %82 {offsets = [1, 0, 0], sizes = [1, 8, 32], strides = [1, 1, 1]} : vector<4x8x32xf32> to vector<1x8x32xf32>
      %86 = vector.shape_cast %85 : vector<1x8x32xf32> to vector<8x32xf32>
      %87 = arith.addf %84, %86 : vector<8x32xf32>
      %88 = vector.extract_strided_slice %82 {offsets = [2, 0, 0], sizes = [1, 8, 32], strides = [1, 1, 1]} : vector<4x8x32xf32> to vector<1x8x32xf32>
      %89 = vector.shape_cast %88 : vector<1x8x32xf32> to vector<8x32xf32>
      %90 = arith.addf %87, %89 : vector<8x32xf32>
      %91 = vector.extract_strided_slice %82 {offsets = [3, 0, 0], sizes = [1, 8, 32], strides = [1, 1, 1]} : vector<4x8x32xf32> to vector<1x8x32xf32>
      %92 = vector.shape_cast %91 : vector<1x8x32xf32> to vector<8x32xf32>
      %93 = arith.addf %90, %92 : vector<8x32xf32>
      %c0_80 = arith.constant 0 : index
      %c0_81 = arith.constant 0 : index
      %94 = vector.load %arg8[%c0_80, %c0_81] : memref<1x32xf32, #tpu.memory_space<vmem>>, vector<1x32xf32>
      %95 = vector.broadcast %94 : vector<1x32xf32> to vector<8x32xf32>
      %96 = arith.addf %93, %95 : vector<8x32xf32>
      %c0_82 = arith.constant 0 : index
      %c0_83 = arith.constant 0 : index
      %c0_84 = arith.constant 0 : index
      %97 = vector.load %arg11[%c0_82, %c0_83, %c0_84] : memref<1x8x32xf32, #tpu.memory_space<vmem>>, vector<1x8x32xf32>
      %98 = vector.shape_cast %97 : vector<1x8x32xf32> to vector<8x32xf32>
      %99 = vector.shape_cast %96 : vector<8x32xf32> to vector<1x8x32xf32>
      tpu.vector_store %arg11[%c0_82, %c0_83, %c0_84], %99 {strides = array<i32>} : memref<1x8x32xf32, #tpu.memory_space<vmem>>, vector<1x8x32xf32>,
    } else {
    }
    return
  }
  func.func @transform_0(%arg0: i32, %arg1: i32, %arg2: i32) -> (i32, i32, i32) {
    %c0_i32 = arith.constant 0 : i32
    %c0_i32_0 = arith.constant 0 : i32
    return %arg0, %arg1, %c0_i32 : i32, i32, i32
  }
  func.func @transform_1(%arg0: i32, %arg1: i32, %arg2: i32) -> (i32, i32, i32) {
    %c0_i32 = arith.constant 0 : i32
    %c0_i32_0 = arith.constant 0 : i32
    return %arg0, %arg2, %c0_i32 : i32, i32, i32
  }
  func.func @transform_2(%arg0: i32, %arg1: i32, %arg2: i32) -> (i32, i32) {
    %c0_i32 = arith.constant 0 : i32
    %c0_i32_0 = arith.constant 0 : i32
    %c0_i32_1 = arith.constant 0 : i32
    return %c0_i32, %c0_i32_0 : i32, i32
  }
  func.func @transform_3(%arg0: i32, %arg1: i32, %arg2: i32) -> (i32, i32) {
    %c0_i32 = arith.constant 0 : i32
    %c0_i32_0 = arith.constant 0 : i32
    %c0_i32_1 = arith.constant 0 : i32
    return %c0_i32, %c0_i32_0 : i32, i32
  }
  func.func @transform_4(%arg0: i32, %arg1: i32, %arg2: i32) -> (i32, i32, i32) {
    %c0_i32 = arith.constant 0 : i32
    %c0_i32_0 = arith.constant 0 : i32
    %c0_i32_1 = arith.constant 0 : i32
    %c0_i32_2 = arith.constant 0 : i32
    return %c0_i32, %c0_i32_0, %c0_i32_1 : i32, i32, i32
  }
  func.func @transform_5(%arg0: i32, %arg1: i32, %arg2: i32) -> (i32, i32) {
    %c0_i32 = arith.constant 0 : i32
    %c0_i32_0 = arith.constant 0 : i32
    %c0_i32_1 = arith.constant 0 : i32
    return %c0_i32, %c0_i32_0 : i32, i32
  }
  func.func @transform_6(%arg0: i32, %arg1: i32, %arg2: i32) -> (i32, i32, i32) {
    %c0_i32 = arith.constant 0 : i32
    %c0_i32_0 = arith.constant 0 : i32
    %c0_i32_1 = arith.constant 0 : i32
    %c0_i32_2 = arith.constant 0 : i32
    return %c0_i32, %c0_i32_0, %c0_i32_1 : i32, i32, i32
  }
  func.func @transform_7(%arg0: i32, %arg1: i32, %arg2: i32) -> (i32, i32, i32, i32) {
    %c0_i32 = arith.constant 0 : i32
    %c0_i32_0 = arith.constant 0 : i32
    return %arg0, %c0_i32, %arg1, %arg2 : i32, i32, i32, i32
  }
  func.func @transform_8(%arg0: i32, %arg1: i32, %arg2: i32) -> (i32, i32, i32) {
    %c0_i32 = arith.constant 0 : i32
    %c0_i32_0 = arith.constant 0 : i32
    return %arg0, %arg1, %c0_i32 : i32, i32, i32
  }
  func.func @transform_9(%arg0: i32, %arg1: i32, %arg2: i32) -> (i32, i32, i32, i32) {
    %c0_i32 = arith.constant 0 : i32
    %c0_i32_0 = arith.constant 0 : i32
    return %arg0, %c0_i32, %arg1, %arg2 : i32, i32, i32, i32
  }
}

</mosaic_0001>

<bundles_post_ra>
// kernel: tpu_custom_call.1
= control target key start
LH: loop header
LB: loop body
LE: loop exit
PB: predicated region body
PF: predicated region fallthrough
CT: control target
= control target key end

     0   :  { %s3642_s0 = inlined_call_operand.hbm [shape: f32[2,8,32], index: 0, kind: input, shape index: {}]   ;;  %s3643_s1 = inlined_call_operand.hbm [shape: f32[2,8,32], index: 1, kind: input, shape index: {}]   ;;  %s3644_s2 = inlined_call_operand.hbm [shape: f32[32,64], index: 2, kind: input, shape index: {}]   ;;  %s3645_s3 = inlined_call_operand.hbm [shape: f32[32,128], index: 3, kind: input, shape index: {}]   ;;  %s3646_s4 = inlined_call_operand.hbm [shape: f32[4,16,32], index: 4, kind: input, shape index: {}]   ;;  %s3647_s5 = inlined_call_operand.hbm [shape: f32[1,32], index: 5, kind: input, shape index: {}]   ;;  %s3648_s6 = inlined_call_operand.hbm [shape: f32[4,1,1], index: 6, kind: input, shape index: {}]   ;;  %s3649_s7 = inlined_call_operand.hbm [shape: f32[2,4,8,8], index: 7, kind: input, shape index: {}]   ;;  %s3650_s8 = inlined_call_operand.hbm [shape: f32[2,8,32], index: 8, kind: output, shape index: {0}]   ;;  %s3651_s9 = inlined_call_operand.hbm [shape: f32[2,4,8,8], index: 9, kind: output, shape index: {1}]  }
   0x1   :  { %3666 = sst [smem:[#allocation36_spill]] %s3642_s0 }
   0x2   :  { %3667 = sst [smem:[#allocation37_spill]] %s3644_s2 }
   0x3   :  { %3668 = sst [smem:[#allocation38_spill]] %s3645_s3 }
   0x4   :  { %3669 = sst [smem:[#allocation39_spill]] %s3646_s4 }
   0x5   :  { %3670 = sst [smem:[#allocation40_spill]] %s3647_s5 }
   0x6   :  { %3671 = sst [smem:[#allocation41_spill]] %s3648_s6 }
   0x7   :  { %3672 = sst [smem:[#allocation42_spill]] %s3650_s8 }
   0x8   :  { %3673 = sst [smem:[#allocation43_spill]] %s3651_s9 }
   0x9   :  { %15 = vsyncpa [#allocation9], 0 }
   0xa   :  { %17 = vsyncpa [#allocation9 + $0x1], 0 }
   0xb   :  { %18 = vsyncpa [#allocation12], 0 }
   0xc   :  { %20 = vsyncpa [#allocation12 + $0x1], 0 }
   0xd   :  { %21 = vsyncpa [#allocation15], 0 }
   0xe   :  { %22 = vsyncpa [#allocation18], 0 }
   0xf   :  { %23 = vsyncpa [#allocation21], 0 }
  0x10   :  { %25 = vsyncpa [#allocation21 + $0x1], 0 }
  0x11   :  { %26 = vsyncpa [#allocation10], 0 }
  0x12   :  { %28 = vsyncpa [#allocation10 + $0x1], 0 }
  0x13   :  { %29 = vsyncpa [#allocation24], 0 }
  0x14   :  { %31 = vsyncpa [#allocation24 + $0x1], 0  ;;  %s2998_s30 = smov 0   ;;  %s3000_s10 = smov 0  }
  0x15   :  { %s3002_s11 = smov 0   ;;  %s3004_s12 = smov 0  }
  0x16   :  { %s3006_s13 = smov 0   ;;  %s3008_s14 = smov 0  }
  0x17 LB: > { %3674 = sst [smem:[#allocation33_spill]] %s2910_s12  ;;  %s3029_s15 = sadd.s32 4294967295, %s2918_s14   ;;  %s2918_s14 = sphi %s3008_s14, %s37_s14   ;;  %s2914_s13 = sphi %s3006_s13, %s3718_s13   ;;  %s2910_s12 = sphi %s3004_s12, %s3717_s12   ;;  %s2906_s11 = sphi %s3002_s11, %s3716_s11   ;;  %s2902_s10 = sphi %s3000_s10, %s3715_s10   ;;  %s2898_s30 = sphi %s2998_s30, %s3714_s30  }
  0x18   : > { %p2173_p0 = scmp.ge.s32.totalorder %s2918_s14, 1  ;;  %p3655_p1 = scmp.eq.s32.totalorder %s3029_s15, 0 }
  0x19   : > { %p310_p2 = scmp.lt.s32.totalorder %s2918_s14, 3  ;;  %s2920_s17 = smov [#allocation13]  }
  0x1a   : > { %s322_s18 = sshll.u32 %s2920_s17, 4  ;;  %s2921_s20 = smov [#allocation14]   ;;  %s3038_s18 = int_to_ptr.vmem [resolvable:$true] %s322_s18 }
  0x1b   : > { %p3034_p3 = pnand %p2173_p0, %p310_p2  ;;  %s335_s21 = sshll.u32 %s2921_s20, 4  ;;  %s3049_s21 = int_to_ptr.vmem [resolvable:$true] %s335_s21 }
  0x1c   : > { %s2922_s22 = smov [#allocation17]   ;;  %s3677_s2 = sld [smem:[#allocation37_spill]] }
  0x1d   : > { %s3675_s16 = scalar_select %p3034_p3, 1, 0 }
  0x1e   : > { %p2412_p4 = pneg %p3034_p3  ;;  %s3051_s23 = sshll.u32 %s2922_s22, 4  ;;  %s363_s23 = int_to_ptr.vmem [resolvable:$true] %s3051_s23 }
  0x20   : > { %p3045_p6 = pnand %p2412_p4, %p3655_p1 }
  0x22   : > { %s2554_s26 = scalar_lea.hbm %s3677_s2, 512  ;;  %p3061_p8 = pneg %p3045_p6 }
  0x23   : > { %p2555_p7 = scmp.ne.s32.totalorder %s3677_s2, %s2554_s26  ;;  %p2561_p11 = scmp.lt.u32.totalorder %s2554_s26, %s3677_s2 }
  0x25   : > { %p2557_p9 = pnand %p3061_p8, %p2555_p7 }
  0x27   : > { %p2558_p10 = pneg %p2557_p9 }
  0x29   : > { %p2563_p12 = pnand %p2561_p11, %p2558_p10 }
  0x2b   : > { %2566 = shalt.err (!%p2563_p12)
}
  0x2c   : > { %s2567_s22 = scalar_lea.vmem %s3038_s18, 512  ;;  %p2575_p4 = scmp.lt.s32.totalorder %s3038_s18, %s3038_s18 }
  0x2d   : > { %p2568_p13 = scmp.ne.s32.totalorder %s3038_s18, %s2567_s22  ;;  %p2576_p5 = scmp.lt.s32.totalorder %s2567_s22, %s2567_s22 }
  0x2f   : > { %p2570_p0 = pnand %p2568_p13, %p3061_p8  ;;  %p2577_p7 = por %p2576_p5, %p2575_p4 }
  0x31   : > { %p2571_p2 = pneg %p2570_p0 }
  0x33   : > { %p2578_p9 = pnand %p2577_p7, %p2571_p2 }
  0x35   : > { %2581 = shalt.err (!%p2578_p9)
}
  0x36   : > { %s3657_s24 = smov 128   ;;  %s3659_s25 = smov 8  }
  0x37   : > { %2415 = dma.hbm_to_vmem [thread:$0]  (!%p3045_p6), %s3677_s2, 512, %s3038_s18, [#allocation12], %s3657_s24, %s3657_s24, %s3659_s25  }
  0x38   : > { %s3679_s3 = sld [smem:[#allocation38_spill]] }
  0x3e   : > { %s2582_s20 = scalar_lea.hbm %s3679_s3, 512 }
  0x3f   : > { %p2583_p5 = scmp.ne.s32.totalorder %s3679_s3, %s2582_s20  ;;  %p2589_p12 = scmp.lt.u32.totalorder %s2582_s20, %s3679_s3 }
  0x41   : > { %p2585_p10 = pnand %p2583_p5, %p3061_p8 }
  0x43   : > { %p2586_p11 = pneg %p2585_p10 }
  0x45   : > { %p2591_p13 = pnand %p2589_p12, %p2586_p11 }
  0x47   : > { %2594 = shalt.err (!%p2591_p13)
}
  0x48   : > { %s2595_s18 = scalar_lea.vmem %s3049_s21, 512  ;;  %p2603_p7 = scmp.lt.s32.totalorder %s3049_s21, %s3049_s21 }
  0x49   : > { %p2596_p0 = scmp.ne.s32.totalorder %s3049_s21, %s2595_s18  ;;  %p2604_p9 = scmp.lt.s32.totalorder %s2595_s18, %s2595_s18 }
  0x4b   : > { %p2598_p2 = pnand %p2596_p0, %p3061_p8  ;;  %p2605_p5 = por %p2604_p9, %p2603_p7 }
  0x4d   : > { %p2599_p4 = pneg %p2598_p2 }
  0x4f   : > { %p2606_p10 = pnand %p2605_p5, %p2599_p4 }
  0x51   : > { %2609 = shalt.err (!%p2606_p10)
}
  0x52   : > { %2418 = dma.hbm_to_vmem [thread:$0]  (!%p3045_p6), %s3679_s3, 512, %s3049_s21, [#allocation15], %s3657_s24, %s3657_s24, %s3659_s25  }
  0x53   : > { %s3680_s5 = sld [smem:[#allocation40_spill]] }
  0x59   : > { %s2610_s27 = scalar_lea.hbm %s3680_s5, 16 }
  0x5a   : > { %p2611_p11 = scmp.ne.s32.totalorder %s3680_s5, %s2610_s27  ;;  %p2617_p0 = scmp.lt.u32.totalorder %s2610_s27, %s3680_s5 }
  0x5c   : > { %p2613_p12 = pnand %p2611_p11, %p3061_p8 }
  0x5e   : > { %p2614_p13 = pneg %p2613_p12 }
  0x60   : > { %p2619_p2 = pnand %p2617_p0, %p2614_p13 }
  0x62   : > { %2622 = shalt.err (!%p2619_p2)
}
  0x63   : > { %s2623_s18 = scalar_lea.vmem %s363_s23, 16  ;;  %s2630_s21 = scalar_lea.vmem %s363_s23, 32 }
  0x64   : > { %p2624_p4 = scmp.ne.s32.totalorder %s363_s23, %s2623_s18  ;;  %p2631_p5 = scmp.lt.s32.totalorder %s363_s23, %s363_s23 }
  0x65   : > { %p2632_p10 = scmp.lt.s32.totalorder %s2630_s21, %s2623_s18 }
  0x66   : > { %p2626_p7 = pnand %p2624_p4, %p3061_p8 }
  0x67   : > { %p2633_p1 = por %p2632_p10, %p2631_p5 }
  0x68   : > { %p2627_p9 = pneg %p2626_p7 }
  0x6a   : > { %p2634_p3 = pnand %p2633_p1, %p2627_p9 }
  0x6c   : > { %2637 = shalt.err (!%p2634_p3)
}
  0x6d   : > { %2424 = dma.hbm_to_vmem [thread:$0]  (!%p3045_p6), %s3680_s5, 16, %s363_s23, [#allocation18]  }
  0x6e   : > { %s2925_s12 = smov [#allocation16]   ;;  %s2926_s27 = smov [#allocation19]  }
  0x6f   : > { %s348_s26 = sshll.u32 %s2925_s12, 4  ;;  %s372_s28 = sshll.u32 %s2926_s27, 4  ;;  %s349_s26 = int_to_ptr.vmem [resolvable:$true] %s348_s26  ;;  %s373_s28 = int_to_ptr.vmem [resolvable:$true] %s372_s28 }
  0x70   : > { %s3681_s4 = sld [smem:[#allocation39_spill]] }
  0x76   : > { %s2638_s22 = scalar_lea.hbm %s3681_s4, 1024 }
  0x77   : > { %p2639_p1 = scmp.ne.s32.totalorder %s3681_s4, %s2638_s22  ;;  %p2645_p12 = scmp.lt.u32.totalorder %s2638_s22, %s3681_s4 }
  0x79   : > { %p2641_p3 = pnand %p2639_p1, %p3061_p8 }
  0x7b   : > { %p2642_p11 = pneg %p2641_p3 }
  0x7d   : > { %p2647_p13 = pnand %p2645_p12, %p2642_p11 }
  0x7f   : > { %2650 = shalt.err (!%p2647_p13)
}
  0x80   : > { %s2651_s23 = scalar_lea.vmem %s349_s26, 1024  ;;  %p2659_p7 = scmp.lt.s32.totalorder %s349_s26, %s349_s26 }
  0x81   : > { %p2652_p0 = scmp.ne.s32.totalorder %s349_s26, %s2651_s23  ;;  %p2660_p9 = scmp.lt.s32.totalorder %s2651_s23, %s2651_s23 }
  0x83   : > { %p2654_p2 = pnand %p2652_p0, %p3061_p8  ;;  %p2661_p5 = por %p2660_p9, %p2659_p7 }
  0x85   : > { %p2655_p4 = pneg %p2654_p2 }
  0x87   : > { %p2662_p10 = pnand %p2661_p5, %p2655_p4 }
  0x89   : > { %2665 = shalt.err (!%p2662_p10)
}
  0x8a   : > { %s3682_s9 = smov 128   ;;  %s3683_s6 = sld [smem:[#allocation41_spill]] }
  0x8b   : > { %2421 = dma.hbm_to_vmem [thread:$0]  (!%p3045_p6), %s3681_s4, 1024, %s349_s26, [#allocation15], %s3682_s9, %s3682_s9, %s3659_s25  }
  0x90   : > { %s2666_s20 = scalar_lea.hbm %s3683_s6, 64 }
  0x91   : > { %p2667_p1 = scmp.ne.s32.totalorder %s3683_s6, %s2666_s20  ;;  %p2673_p12 = scmp.lt.u32.totalorder %s2666_s20, %s3683_s6 }
  0x93   : > { %p2669_p3 = pnand %p2667_p1, %p3061_p8 }
  0x95   : > { %p2670_p11 = pneg %p2669_p3 }
  0x97   : > { %p2675_p13 = pnand %p2673_p12, %p2670_p11 }
  0x99   : > { %2678 = shalt.err (!%p2675_p13)
}
  0x9a   : > { %s2679_s23 = scalar_lea.vmem %s373_s28, 64  ;;  %p2687_p7 = scmp.lt.s32.totalorder %s373_s28, %s373_s28 }
  0x9b   : > { %p2680_p0 = scmp.ne.s32.totalorder %s373_s28, %s2679_s23  ;;  %p2688_p9 = scmp.lt.s32.totalorder %s2679_s23, %s2679_s23 }
  0x9d   : > { %p2682_p2 = pnand %p2680_p0, %p3061_p8  ;;  %p2689_p5 = por %p2688_p9, %p2687_p7 }
  0x9f   : > { %p2683_p4 = pneg %p2682_p2 }
  0xa1   : > { %p2690_p10 = pnand %p2689_p5, %p2683_p4 }
  0xa3   : > { %2693 = shalt.err (!%p2690_p10)
}
  0xa4   : > { %s2927_s26 = smov 16   ;;  %s2928_s29 = smov 1  }
  0xa5   : > { %2427 = dma.hbm_to_vmem [thread:$0]  (!%p3045_p6), %s3683_s6, 64, %s373_s28, [#allocation18], %s2927_s26, %s2927_s26, %s2928_s29  }
  0xa6   : > { %s2172_s27 = sadd.s32 4294967294, %s2918_s14   ;;  %s56_s17 = sadd.s32 1, %s2914_s13 }
  0xa7   : > { %s65_s20 = sadd.s32 1, %s2906_s11  ;;  %p58_p8 = scmp.ge.s32.totalorder %s56_s17, 2 }
  0xa8   : > { %p72_p1 = scmp.ne.s32.totalorder %s2906_s11, %s2902_s10  ;;  %p73_p3 = scmp.eq.s32.totalorder %s2918_s14, 0 }
  0xa9   : > { %p78_p11 = scmp.ne.s32.totalorder %s2902_s10, %s2898_s30  ;;  %s3720_s17 = smov (%p58_p8, %s56_s17), 0 }
  0xaa   : > { %3684 = sst [smem:[#allocation34_spill]] %s3720_s17  ;;  %p3179_p12 = por %p73_p3, %p72_p1 }
  0xab   : > { %p3686_p13 = scmp.eq.s32.totalorder %s3029_s15, 0  ;;  %s60_s22 = ssub.s32 %s2914_s13, %s3720_s17 }
  0xac   : > { %p267_p0 = scmp.eq.s32.totalorder %s3029_s15, 1  ;;  %p63_p2 = scmp.eq.s32.totalorder %s60_s22, 0 }
  0xad   : > { %p3185_p6 = por %p3686_p13, %p78_p11  ;;  %p273_p4 = scmp.eq.s32.totalorder %s2172_s27, 1 }
  0xae   : > { %p3192_p7 = por %p267_p0, %p72_p1  ;;  %p2450_p9 = scmp.lt.s32.totalorder %s2918_s14, 2 }
  0xaf   : > { %s3687_s28 = scalar_select %p3185_p6, 1, 0 }
  0xb0   : > { %s3688_s18 = scalar_select %p3192_p7, 1, 0 }
  0xb1   : > { %s3198_s21 = scalar_select %p63_p2, %s2906_s11, %s65_s20  }
  0xb2   : > { %p3200_p5 = por %p273_p4, %p78_p11  ;;  %s3205_s23 = sand.u32 1, %s2906_s11  }
  0xb3   : > { %3689 = sst [smem:[#allocation35_spill]] %s3198_s21  ;;  %s3660_s26 = sshll.u32 %s3205_s23, 3 }
  0xb4   : > { %s3690_s8 = scalar_select %p3200_p5, 1, 0 }
  0xb5   : > { %s2181_s29 = sshll.u32 %s2914_s13, 7  ;;  %s3691_s0 = sld [smem:[#allocation36_spill]] }
  0xb6   : > { %s390_s20 = scalar_lea.vmem [#allocation8], %s3660_s26  ;;  %p3220_p10 = pnand %p2450_p9, %p3179_p12 }
  0xb7   : > { %s398_s22 = sshll.u32 %s390_s20, 4  ;;  %s3227_s24 = scalar_lea.hbm %s3643_s1, %s2181_s29  ;;  %s3216_s22 = int_to_ptr.vmem [resolvable:$true] %s398_s22 }
  0xb8   : > { %s3692_s25 = scalar_select %p3220_p10, 1, 0 }
  0xb9   : > { %s387_s4 = scalar_lea.sflag [#allocation9], %s3205_s23  ;;  %p3235_p1 = pneg %p3220_p10 }
  0xbb   : > { %s3212_s27 = scalar_lea.hbm %s3691_s0, %s2181_s29  ;;  %s2699_s2 = scalar_lea.hbm %s3691_s0, 256 }
  0xbc   : > { %s2694_s5 = scalar_lea.hbm %s3212_s27, 128  ;;  %p2700_p12 = scmp.lt.u32.totalorder %s3212_s27, %s3691_s0 }
  0xbd   : > { %p2695_p8 = scmp.ne.s32.totalorder %s3212_s27, %s2694_s5  ;;  %p2701_p13 = scmp.lt.u32.totalorder %s2699_s2, %s2694_s5 }
  0xbe   : > { %p2703_p2 = scmp.lt.u32.totalorder %s2694_s5, %s3212_s27 }
  0xbf   : > { %p2697_p3 = pnand %p3235_p1, %p2695_p8  ;;  %p2702_p0 = por %p2701_p13, %p2700_p12 }
  0xc1   : > { %p2698_p11 = pneg %p2697_p3  ;;  %p2704_p4 = por %p2703_p2, %p2702_p0 }
  0xc3   : > { %p2705_p9 = pnand %p2704_p4, %p2698_p11 }
  0xc5   : > { %2708 = shalt.err (!%p2705_p9)
}
  0xc6   : > { %s2709_s12 = scalar_lea.vmem %s3216_s22, 128  ;;  %s2929_s26 = smov [#allocation8]  }
  0xc7   : > { %p2710_p8 = scmp.ne.s32.totalorder %s3216_s22, %s2709_s12  ;;  %s2714_s19 = sshll.u32 %s2929_s26, 4  ;;  %s2715_s19 = int_to_ptr.vmem [resolvable:$false] %s2714_s19 }
  0xc8   : > { %s2716_s3 = scalar_lea.vmem %s2715_s19, 256  ;;  %p2717_p7 = scmp.lt.s32.totalorder %s3216_s22, %s2715_s19 }
  0xc9   : > { %p2712_p3 = pnand %p2710_p8, %p3235_p1  ;;  %p2718_p6 = scmp.lt.s32.totalorder %s2716_s3, %s2709_s12 }
  0xcb   : > { %p2713_p5 = pneg %p2712_p3  ;;  %p2719_p12 = por %p2718_p6, %p2717_p7 }
  0xcd   : > { %p2720_p13 = pnand %p2719_p12, %p2713_p5 }
  0xcf   : > { %2723 = shalt.err (!%p2720_p13)
}
  0xd0   : > { %2431 = dma.hbm_to_vmem [thread:$0]  (!%p3220_p10), %s3212_s27, 128, %s3216_s22, %s387_s4  }
  0xd1   : > { %s3694_s5 = sshll.u32 %s3205_s23, 3  ;;  %s3695_s12 = sand.u32 1, %s2918_s14  }
  0xd2   : > { %s409_s2 = scalar_lea.vmem [#allocation11], %s3694_s5  ;;  %s406_s26 = scalar_lea.sflag [#allocation12], %s3695_s12 }
  0xd3   : > { %s417_s29 = sshll.u32 %s409_s2, 4  ;;  %s2724_s19 = scalar_lea.hbm %s3227_s24, 128  ;;  %s418_s29 = int_to_ptr.vmem [resolvable:$true] %s417_s29 }
  0xd4   : > { %p2725_p6 = scmp.ne.s32.totalorder %s3227_s24, %s2724_s19  ;;  %s2729_s6 = scalar_lea.hbm %s3643_s1, 256 }
  0xd5   : > { %p2730_p11 = scmp.lt.u32.totalorder %s3227_s24, %s3643_s1  ;;  %p2731_p0 = scmp.lt.u32.totalorder %s2729_s6, %s2724_s19 }
  0xd6   : > { %p2727_p7 = pnand %p2725_p6, %p3235_p1  ;;  %p2733_p4 = scmp.lt.u32.totalorder %s2724_s19, %s3227_s24 }
  0xd7   : > { %p2732_p2 = por %p2731_p0, %p2730_p11 }
  0xd8   : > { %p2728_p5 = pneg %p2727_p7 }
  0xd9   : > { %p2734_p9 = por %p2733_p4, %p2732_p2 }
  0xdb   : > { %p2735_p8 = pnand %p2734_p9, %p2728_p5 }
  0xdd   : > { %2738 = shalt.err (!%p2735_p8)
}
  0xde   : > { %s2739_s4 = scalar_lea.vmem %s418_s29, 128  ;;  %s2930_s27 = smov [#allocation11]  }
  0xdf   : > { %p2740_p3 = scmp.ne.s32.totalorder %s418_s29, %s2739_s4  ;;  %s2744_s22 = sshll.u32 %s2930_s27, 4  ;;  %s2745_s22 = int_to_ptr.vmem [resolvable:$false] %s2744_s22 }
  0xe0   : > { %s2746_s0 = scalar_lea.vmem %s2745_s22, 256  ;;  %p2747_p6 = scmp.lt.s32.totalorder %s418_s29, %s2745_s22 }
  0xe1   : > { %p2742_p12 = pnand %p2740_p3, %p3235_p1  ;;  %p2748_p7 = scmp.lt.s32.totalorder %s2746_s0, %s2739_s4 }
  0xe3   : > { %p2743_p13 = pneg %p2742_p12  ;;  %p2749_p10 = por %p2748_p7, %p2747_p6 }
  0xe5   : > { %p2750_p0 = pnand %p2749_p10, %p2743_p13 }
  0xe7   : > { %2753 = shalt.err (!%p2750_p0)
}
  0xe8   : > { %p3696_p11 = scmp.ne.s32.totalorder %s3692_s25, 0  ;;  %s2184_s6 = sshll.u32 %s3205_s23, 5 }
  0xe9   : > { %s2228_s17 = sshll.u32 %s2914_s13, 9  ;;  %s428_s12 = scalar_lea.vmem [#allocation20], %s2184_s6 }
  0xea   : > { %2434 = dma.hbm_to_vmem [thread:$0]  (!%p3696_p11), %s3227_s24, 128, %s418_s29, %s406_s26  }
  0xeb   : > { %s3284_s2 = scalar_lea.hbm %s3649_s7, %s2228_s17  ;;  %s437_s19 = sshll.u32 %s428_s12, 4  ;;  %s3286_s19 = int_to_ptr.vmem [resolvable:$true] %s437_s19 }
  0xec   : > { %s425_s3 = scalar_lea.sflag [#allocation21], %s3205_s23  ;;  %s2754_s4 = scalar_lea.hbm %s3284_s2, 512 }
  0xed   : > { %p2755_p10 = scmp.ne.s32.totalorder %s3284_s2, %s2754_s4  ;;  %s2759_s26 = scalar_lea.hbm %s3649_s7, 1024 }
  0xee   : > { %p2760_p4 = scmp.lt.u32.totalorder %s3284_s2, %s3649_s7  ;;  %p2761_p9 = scmp.lt.u32.totalorder %s2759_s26, %s2754_s4 }
  0xef   : > { %p2757_p5 = pnand %p2755_p10, %p3235_p1  ;;  %p2763_p3 = scmp.lt.u32.totalorder %s2754_s4, %s3284_s2 }
  0xf0   : > { %p2762_p8 = por %p2761_p9, %p2760_p4 }
  0xf1   : > { %p2758_p2 = pneg %p2757_p5 }
  0xf2   : > { %p2764_p12 = por %p2763_p3, %p2762_p8 }
  0xf4   : > { %p2765_p13 = pnand %p2764_p12, %p2758_p2 }
  0xf6   : > { %2768 = shalt.err (!%p2765_p13)
}
  0xf7   : > { %s2769_s0 = scalar_lea.vmem %s3286_s19, 512  ;;  %s2931_s6 = smov [#allocation20]  }
  0xf8   : > { %p2770_p6 = scmp.ne.s32.totalorder %s3286_s19, %s2769_s0  ;;  %s2774_s17 = sshll.u32 %s2931_s6, 4  ;;  %s2775_s17 = int_to_ptr.vmem [resolvable:$false] %s2774_s17 }
  0xf9   : > { %s2776_s21 = scalar_lea.vmem %s2775_s17, 1024  ;;  %p2777_p10 = scmp.lt.s32.totalorder %s3286_s19, %s2775_s17 }
  0xfa   : > { %p2772_p7 = pnand %p2770_p6, %p3235_p1  ;;  %p2778_p5 = scmp.lt.s32.totalorder %s2776_s21, %s2769_s0 }
  0xfc   : > { %p2773_p0 = pneg %p2772_p7  ;;  %p2779_p4 = por %p2778_p5, %p2777_p10 }
  0xfe   : > { %p2780_p9 = pnand %p2779_p4, %p2773_p0 }
 0x100   : > { %2783 = shalt.err (!%p2780_p9)
}
 0x101   : > { %s3697_s5 = smov 8   ;;  %p3698_p1 = scmp.ne.s32.totalorder %s3675_s16, 0 }
 0x102   : > { %2437 = dma.hbm_to_vmem [thread:$0]  (!%p3696_p11), %s3284_s2, 512, %s3286_s19, %s425_s3, %s3682_s9, %s3682_s9, %s3697_s5  }
 0x103   : > { %449 = sbr.rel (%p3698_p1) target bundleno = 1667 (0x683), region = 52  ;;  %s3318_s20 = sand.u32 (!%p3698_p1), 1, %s2902_s10  }
 0x104   : > { %s3321_s12 = sshll.u32 (!%p3698_p1), %s3318_s20, 3  ;;  %s452_s25 = scalar_lea.sflag (!%p3698_p1), [#allocation9], %s3318_s20 }
 0x105   : > { %s455_s4 = scalar_lea.vmem (!%p3698_p1), [#allocation8], %s3321_s12  ;;  %p3699_p2 = scmp.ne.s32.totalorder (!%p3698_p1), %s3687_s28, 0 }
 0x10a   : > { %2865 = dma.done.wait (%p3699_p2), %s452_s25, 128  }
 0x10b   : > { %2867 = vsyncadd (%p3699_p2), %s452_s25, 4294967168  ;;  %s460_s16 = sand.u32 1, %s3029_s15   ;;  %s464_s23 = scalar_lea.vmem [#allocation11], %s3321_s12 }
 0x10c   : > { %s461_s9 = scalar_lea.sflag [#allocation12], %s460_s16 }
 0x10d   : > { %2869 = dma.done.wait (%p3699_p2), %s461_s9, 128  }
 0x10e   : > { %2871 = vsyncadd (%p3699_p2), %s461_s9, 4294967168  ;;  %p3700_p11 = scmp.eq.s32.totalorder %s3029_s15, 0 }
 0x110   : > { %2873 = dma.done.wait (%p3700_p11), [#allocation12], 512   ;;  %p3701_p8 = pmov %p3700_p11 }
 0x112   : > { %2875 = vsyncadd (%p3701_p8), [#allocation12], 4294966784  ;;  %p3702_p3 = pmov %p3701_p8 }
 0x114   : > { %2877 = dma.done.wait (%p3702_p3), [#allocation15], 1536   ;;  %p3703_p12 = pmov %p3702_p3 }
 0x115   : > { %p3704_p13 = pmov %p3702_p3 }
 0x116   : > { %2879 = vsyncadd (%p3703_p12), [#allocation15], 4294965760 }
 0x117   : > { %2881 = dma.done.wait (%p3704_p13), [#allocation18], 80   ;;  %p3705_p6 = pmov %p3702_p3 }
 0x118   : > { %s2195_s2 = sshll.u32 %s3318_s20, 5  ;;  %s490_s19 = scalar_lea.sflag [#allocation21], %s3318_s20 }
 0x119   : > { %2883 = vsyncadd (%p3705_p6), [#allocation18], 4294967216  ;;  %s3351_s3 = scalar_lea.vmem [#allocation20], %s2195_s2 }
 0x11a   : > { %2885 = dma.done.wait (%p3699_p2), %s490_s19, 512  }
 0x11b   : > { %2887 = vsyncadd (%p3699_p2), %s490_s19, 4294966784  ;;  %v2932_v0 = vmov 0.0|0.0   ;;  %vm2933_vm0 = vmmov 0   ;;  %v2934_v1 = vmov 0.0   ;;  %v548_v2 = vld [vmem:[#allocation13] sm:$0xff]  ;;  %v549_v3 = vld [vmem:[#allocation13 + $0x8] sm:$0xff] }
 0x11c   : > { %2358 = vmatprep.subr.bf16.mxu0 %v2932_v0  ;;  %2364 = vmatprep.subr.bf16.mxu1 %v2932_v0  ;;  %v658_v4 = vld [vmem:[#allocation14] sm:$0xff]  ;;  %v2359_v5 = vpack.c.bf16 %v549_v3, %v548_v2  ;;  %v659_v6 = vld [vmem:[#allocation14 + $0x8] sm:$0xff]  ;;  %v550_v7 = vld [vmem:[#allocation13 + $0x10] sm:$0xff]  ;;  %vm552_vm1 = vcmask 261120   ;;  %vm626_vm2 = vcmask 130048   ;;  %v2935_v16 = vmov 0  }
 0x11d   : > { %2276 = vmatprep.mubr.msk.f32.mxu0 %vm2933_vm0, %v2934_v1  ;;  %2287 = vmatprep.mubr.msk.f32.mxu1 %vm2933_vm0, %v2934_v1  ;;  %v551_v8 = vld [vmem:[#allocation13 + $0x18] sm:$0xff]  ;;  %v2365_v9 = vpack.c.bf16 %v659_v6, %v658_v4  ;;  %v660_v10 = vld [vmem:[#allocation14 + $0x10] sm:$0xff]  ;;  %v547_v14 = vld [vmem:[%s455_s4] sm:$0xff]  ;;  %653 = vst.msk [vmem:[#allocation5] sm:$0xff] %vm626_vm2, %v2934_v1  ;;  %s2936_s15 = smov 112   ;;  %s2937_s28 = smov 80  }
 0x11e   : > { %v661_v11 = vld [vmem:[#allocation14 + $0x18] sm:$0xff]  ;;  %2360 = vmatpush3.bf16.msra.mxu0 %v2359_v5  ;;  %v2362_v12 = vpack.c.bf16 %v551_v8, %v550_v7  ;;  %654 = vst.msk [vmem:[#allocation5 + $0x8] sm:$0xff] %vm626_vm2, %v2934_v1  ;;  %655 = vst.msk [vmem:[#allocation5 + $0x10] sm:$0xff] %vm626_vm2, %v2934_v1  ;;  %2528 = vset.pattern.permute.xlu0 %v2935_v16  ;;  %s2938_s24 = smov 96   ;;  %v2201_v23 = vld [vmem:[#allocation19 + $0x1] ss:$0 sm:$0xff] }
 0x11f   : > { %2366 = vmatpush3.bf16.msra.mxu1 %v2365_v9  ;;  %2361 = vmatprep.subr.bf16.mxu0 %v2932_v0  ;;  %v2368_v13 = vpack.c.bf16 %v661_v11, %v660_v10  ;;  %v657_v15 = vld [vmem:[%s464_s23] sm:$0xff]  ;;  %656 = vst.msk [vmem:[#allocation5 + $0x18] sm:$0xff] %vm626_vm2, %v2934_v1  ;;  %v2200_v24 = vld [vmem:[#allocation19] ss:$0 sm:$0xff]  ;;  %v2202_v25 = vld [vmem:[#allocation19 + $0x2] ss:$0 sm:$0xff] }
 0x120   : > { %2367 = vmatprep.subr.bf16.mxu1 %v2932_v0  ;;  %2529 = vset.pattern.permute.xlu1 %v2935_v16  ;;  %v2203_v26 = vld [vmem:[#allocation19 + $0x3] ss:$0 sm:$0xff]  ;;  %v785_v39 = vld [vmem:[%s3351_s3] sm:$0xff]  ;;  %vm644_vm3 = vcmask 7168   ;;  %v2939_v42 = vmov -inf   ;;  %vm1133_vm4 = vcmask 64512  }
 0x121   : > { %645 = vst.msk [vmem:[#allocation6] sm:$0xff] %vm644_vm3, %v2939_v42  ;;  %646 = vst.msk [vmem:[#allocation6 + $0x8] sm:$0xff] %vm644_vm3, %v2939_v42  ;;  %s3436_s29 = scalar_lea.vmem [#allocation23], %s2195_s2  ;;  %v786_v47 = vld [vmem:[%s3351_s3 + $0x8] sm:$0xff]  ;;  %v788_v50 = vld [vmem:[%s3351_s3 + $0x18] sm:$0xff]  ;;  %s2940_s26 = smov 48  }
 0x122   : > { %2363 = vmatpush3.bf16.msra.mxu0 %v2362_v12  ;;  %647 = vst.msk [vmem:[#allocation6 + $0x10] sm:$0xff] %vm644_vm3, %v2939_v42  ;;  %648 = vst.msk [vmem:[#allocation6 + $0x18] sm:$0xff] %vm644_vm3, %v2939_v42  ;;  %v787_v53 = vld [vmem:[%s3351_s3 + $0x10] sm:$0xff]  ;;  %s2941_s27 = smov 64   ;;  %s2942_s22 = smov 16  }
 0x123   : > { %2369 = vmatpush3.bf16.msra.mxu1 %v2368_v13  ;;  %2290 = vmatprep.subr.mxu0 %v2934_v1  ;;  %649 = vst.msk [vmem:[#allocation7] sm:$0xff] %vm644_vm3, %v2934_v1  ;;  %650 = vst.msk [vmem:[#allocation7 + $0x8] sm:$0xff] %vm644_vm3, %v2934_v1  ;;  %s2943_s0 = smov 32   ;;  %s3706_s6 = sld [smem:[#allocation33_spill]] }
 0x124   : > { %2295 = vmatprep.subr.mxu1 %v2934_v1  ;;  %651 = vst.msk [vmem:[#allocation7 + $0x10] sm:$0xff] %vm644_vm3, %v2934_v1  ;;  %652 = vst.msk [vmem:[#allocation7 + $0x18] sm:$0xff] %vm644_vm3, %v2934_v1  ;;  %s1953_s17 = sshll.u32 %s3436_s29, 4  ;;  %s3707_s4 = sld [smem:[#allocation43_spill]]  ;;  %s3555_s17 = int_to_ptr.vmem [resolvable:$true] %s1953_s17 }
 0x125   : > { %2277 = vmatmul.mubr.msk.f32.vlgmr.msra.gmra.mrb[0].mxu0 %vm552_vm1, %v547_v14  ;;  %s1924_s9 = scalar_lea.sflag [#allocation24], %s3318_s20  ;;  %s2784_s23 = scalar_lea.vmem %s3555_s17, 512 }
 0x126   : > { %2288 = vmatmul.mubr.msk.f32.vlgmr.msra.gmra.mrb[0].mxu1 %vm552_vm1, %v657_v15  ;;  %2292 = vmatprep.mubr.msk.f32.mxu0 %vm2933_vm0, %v2934_v1  ;;  %p2785_p7 = scmp.ne.s32.totalorder %s3555_s17, %s2784_s23  ;;  %p3708_p0 = scmp.ne.s32.totalorder %s3688_s18, 0 }
 0x127   : > { %2297 = vmatprep.mubr.msk.f32.mxu1 %vm2933_vm0, %v2934_v1  ;;  %s2944_s2 = smov [#allocation23]  }
 0x128   : > { %v3455_v6 = vld [vmem:[#allocation6] sm:$0xff]  ;;  %v3465_v10 = vld [vmem:[#allocation6 + $0x8] sm:$0xff]  ;;  %p2786_p10 = pnand %p2785_p7, %p3708_p0  ;;  %s2788_s19 = sshll.u32 %s2944_s2, 4  ;;  %s2789_s19 = int_to_ptr.vmem [resolvable:$false] %s2788_s19 }
 0x129   : > { %v3470_v13 = vld [vmem:[#allocation6 + $0x18] sm:$0xff]  ;;  %v3477_v15 = vld [vmem:[#allocation6 + $0x10] sm:$0xff]  ;;  %s2229_s21 = sshll.u32 %s3706_s6, 9  ;;  %s2790_s3 = scalar_lea.vmem %s2789_s19, 1024 }
 0x12a   : > { %s3561_s16 = scalar_lea.hbm %s3707_s4, %s2229_s21  ;;  %p2787_p5 = pneg %p2786_p10 }
 0x12b   : > { %p2791_p4 = scmp.lt.s32.totalorder %s3555_s17, %s2789_s19  ;;  %p2792_p9 = scmp.lt.s32.totalorder %s2790_s3, %s2784_s23 }
 0x12d   : > { %p2793_p1 = por %p2792_p9, %p2791_p4 }
 0x12f   : > { %p2794_p2 = pnand %p2793_p1, %p2787_p5 }
 0x1f8   : > { %v622_v17 = vpop.f32.mrb[0].mxu0 }
 0x1f9   : > { %627 = vst.msk [vmem:[#allocation2] sm:$0xff] %vm626_vm2, %v622_v17  ;;  %v3386_v18 = vpop.f32.mrb[0].mxu1  ;;  %629 = vrot.lane.b32.xlu1 %v622_v17, %s2936_s15  ;;  %v2278_v19 = vpop.f32.mrb[1].mxu0 }
 0x1fa   : > { %737 = vst.msk [vmem:[#allocation3] sm:$0xff] %vm626_vm2, %v3386_v18  ;;  %743 = vrot.lane.b32.xlu0 %v3386_v18, %s2936_s15  ;;  %v2289_v20 = vpop.f32.mrb[1].mxu1 }
 0x1fd   : > { %763 = vrot.lane.b32.xlu1 %v3386_v18, %s2937_s28 }
 0x1fe   : > { %753 = vrot.lane.b32.xlu0 %v3386_v18, %s2938_s24 }
 0x200   : > { %v773_v22 = vld [vmem:[#allocation2] sm:$0xff] }
 0x201   : > { %v777_v21 = vld [vmem:[#allocation3] sm:$0xff]  ;;  %639 = vrot.lane.b32.xlu1 %v622_v17, %s2937_s28 }
 0x202   : > { %2291 = vmatpush3.xpose.msk.msra.mxu0 %vm626_vm2, %v777_v21  ;;  %634 = vrot.lane.b32.xlu0 %v622_v17, %s2938_s24 }
 0x203   : > { %2300 = vmatprep.subr.mxu0 %v2934_v1 }
 0x205   : > { %2293 = vmatmul.mubr.msk.f32.vlgmr.msra.gmra.mrb[2].mxu0 %vm626_vm2, %v773_v22  ;;  %814 = vperm.xlu1 %2529, %v2201_v23  }
 0x206   : > { %810 = vperm.xlu0 %2528, %v2200_v24   ;;  %2302 = vmatprep.mubr.msk.f32.mxu0 %vm2933_vm0, %v2934_v1 }
 0x209   : > { %818 = vperm.xlu1 %2529, %v2202_v25  }
 0x20a   : > { %822 = vperm.xlu0 %2528, %v2203_v26  }
 0x26b   : > { %v630_v27 = vpop.permute.xlu1 %629 }
 0x26c   : > { %v744_v28 = vpop.permute.xlu0 %743  ;;  %633 = vst.msk [vmem:[#allocation2 + $0x8] sm:$0xff] %vm626_vm2, %v630_v27 }
 0x26d   : > { %747 = vst.msk [vmem:[#allocation3 + $0x8] sm:$0xff] %vm626_vm2, %v744_v28 }
 0x26f   : > { %v764_v29 = vpop.permute.xlu1 %763 }
 0x270   : > { %v754_v30 = vpop.permute.xlu0 %753  ;;  %767 = vst.msk [vmem:[#allocation3 + $0x18] sm:$0xff] %vm626_vm2, %v764_v29 }
 0x271   : > { %757 = vst.msk [vmem:[#allocation3 + $0x10] sm:$0xff] %vm626_vm2, %v754_v30 }
 0x273   : > { %v640_v31 = vpop.permute.xlu1 %639  ;;  %v774_v34 = vld [vmem:[#allocation2 + $0x8] sm:$0xff] }
 0x274   : > { %v635_v32 = vpop.permute.xlu0 %634  ;;  %643 = vst.msk [vmem:[#allocation2 + $0x18] sm:$0xff] %vm626_vm2, %v640_v31  ;;  %v778_v33 = vld [vmem:[#allocation3 + $0x8] sm:$0xff] }
 0x275   : > { %638 = vst.msk [vmem:[#allocation2 + $0x10] sm:$0xff] %vm626_vm2, %v635_v32  ;;  %2296 = vmatpush3.xpose.msk.msra.mxu1 %vm626_vm2, %v778_v33 }
 0x276   : > { %2305 = vmatprep.subr.mxu1 %v2934_v1 }
 0x277   : > { %v780_v35 = vld [vmem:[#allocation3 + $0x18] sm:$0xff] }
 0x278   : > { %2298 = vmatmul.mubr.msk.f32.vlgmr.msra.gmra.mrb[2].mxu1 %vm626_vm2, %v774_v34  ;;  %v779_v36 = vld [vmem:[#allocation3 + $0x10] sm:$0xff] }
 0x279   : > { %2301 = vmatpush3.xpose.msk.msra.mxu0 %vm626_vm2, %v779_v36  ;;  %2306 = vmatpush3.xpose.msk.msra.mxu1 %vm626_vm2, %v780_v35 }
 0x27a   : > { %2307 = vmatprep.mubr.msk.f32.mxu1 %vm2933_vm0, %v2934_v1  ;;  %2310 = vmatprep.subr.mxu0 %v2934_v1 }
 0x27b   : > { %v776_v37 = vld [vmem:[#allocation2 + $0x18] sm:$0xff]  ;;  %2315 = vmatprep.subr.mxu1 %v2934_v1 }
 0x27c   : > { %v775_v38 = vld [vmem:[#allocation2 + $0x10] sm:$0xff]  ;;  %2308 = vmatmul.mubr.msk.f32.vlgmr.msra.gmra.mrb[4].mxu1 %vm626_vm2, %v776_v37 }
 0x27d   : > { %2303 = vmatmul.mubr.msk.f32.vlgmr.msra.gmra.mrb[4].mxu0 %vm626_vm2, %v775_v38  ;;  %2317 = vmatprep.mubr.msk.f32.mxu1 %vm2933_vm0, %v2934_v1 }
 0x27e   : > { %2312 = vmatprep.mubr.msk.f32.mxu0 %vm2933_vm0, %v2934_v1 }
 0x284   : > { %v815_v48 = vpop.permute.xlu1 %814 }
 0x285   : > { %v811_v40 = vpop.permute.xlu0 %810  ;;  %v826_v49 = vmul.f32 %v815_v48, %v786_v47 }
 0x286   : > { %v825_v41 = vmul.f32 %v811_v40, %v785_v39 }
 0x288   : > { %v819_v54 = vpop.permute.xlu1 %818 }
 0x289   : > { %v823_v51 = vpop.permute.xlu0 %822  ;;  %v827_v59 = vmul.f32 %v819_v54, %v787_v53  ;;  %v1202_v54 = vld [vmem:[#allocation7] sm:$0xff] }
 0x28a   : > { %v828_v57 = vmul.f32 %v823_v51, %v788_v50 }
 0x2d8   : > { %v901_v43 = vpop.f32.mrb[2].mxu0 }
 0x2d9   : > { %v3432_v44 = vadd.f32 %v901_v43, %v825_v41  ;;  %v2294_v45 = vpop.f32.mrb[3].mxu0 }
 0x2db   : > { %1134 = vst.msk [vmem:[%s3436_s29] sm:$0xff] %vm1133_vm4, %v3432_v44  ;;  %v1142_v46 = vsel %vm1133_vm4, %v3432_v44, -inf }
 0x2dc   : > { %1143 = vmax.xlane.f32.xlu1 %v1142_v46 }
 0x34b   : > { %v977_v52 = vpop.f32.mrb[2].mxu1 }
 0x34c   : > { %v978_v55 = vadd.f32 %v977_v52, %v826_v49  ;;  %v2299_v56 = vpop.f32.mrb[3].mxu1 }
 0x34e   : > { %1135 = vst.msk [vmem:[%s3436_s29 + $0x8] sm:$0xff] %vm1133_vm4, %v978_v55  ;;  %v1145_v58 = vsel %vm1133_vm4, %v978_v55, -inf }
 0x34f   : > { %1146 = vmax.xlane.f32.xlu0 %v1145_v58  ;;  %v1129_v60 = vpop.f32.mrb[4].mxu1 }
 0x350   : > { %v1053_v61 = vpop.f32.mrb[4].mxu0  ;;  %v1130_v62 = vadd.f32 %v1129_v60, %v828_v57  ;;  %v2309_v63 = vpop.f32.mrb[5].mxu1 }
 0x351   : > { %v1054_v2 = vadd.f32 %v1053_v61, %v827_v59  ;;  %v2304_v3 = vpop.f32.mrb[5].mxu0  ;;  %v1606_v63 = vld [vmem:[#allocation16] sm:$0xff] }
 0x352   : > { %1137 = vst.msk [vmem:[%s3436_s29 + $0x18] sm:$0xff] %vm1133_vm4, %v1130_v62  ;;  %v1151_v4 = vsel %vm1133_vm4, %v1130_v62, -inf }
 0x353   : > { %1136 = vst.msk [vmem:[%s3436_s29 + $0x10] sm:$0xff] %vm1133_vm4, %v1054_v2  ;;  %1152 = vmax.xlane.f32.xlu1 %v1151_v4  ;;  %v1148_v5 = vsel %vm1133_vm4, %v1054_v2, -inf  ;;  %v1203_v4 = vld [vmem:[#allocation7 + $0x8] sm:$0xff] }
 0x354   : > { %1149 = vmax.xlane.f32.xlu0 %v1148_v5 }
 0x369   : > { %v1144_v7 = vpop.xlane.xlu1 %1143 }
 0x36a   : > { %v3458_v8 = vmax.f32 %v3455_v6, %v1144_v7  ;;  %v1205_v7 = vld [vmem:[#allocation7 + $0x18] sm:$0xff] }
 0x36c   : > { %v1158_v9 = vsub.f32 %v3455_v6, %v3458_v8  ;;  %1231 = vst.msk [vmem:[#allocation6] sm:$0xff] %vm644_vm3, %v3458_v8  ;;  %1172 = vperm.xlu0 %2528, %v3458_v8  }
 0x36e   : > { %v1162_v51 = vmul.f32 1.442695, %v1158_v9  ;;  %v1204_v9 = vld [vmem:[#allocation7 + $0x10] sm:$0xff] }
 0x3dc   : > { %v1147_v11 = vpop.xlane.xlu0 %1146 }
 0x3dd   : > { %v3468_v12 = vmax.f32 %v3465_v10, %v1147_v11 }
 0x3df   : > { %v1159_v14 = vsub.f32 %v3465_v10, %v3468_v12  ;;  %1232 = vst.msk [vmem:[#allocation6 + $0x8] sm:$0xff] %vm644_vm3, %v3468_v12  ;;  %1177 = vperm.xlu1 %2529, %v3468_v12  }
 0x3e0   : > { %v1153_v16 = vpop.xlane.xlu1 %1152 }
 0x3e1   : > { %v3480_v17 = vmax.f32 %v3470_v13, %v1153_v16  ;;  %v1150_v19 = vpop.xlane.xlu0 %1149  ;;  %v1164_v50 = vmul.f32 1.442695, %v1159_v14 }
 0x3e2   : > { %v3483_v20 = vmax.f32 %v3477_v15, %v1150_v19 }
 0x3e3   : > { %v1161_v21 = vsub.f32 %v3470_v13, %v3480_v17  ;;  %1234 = vst.msk [vmem:[#allocation6 + $0x18] sm:$0xff] %vm644_vm3, %v3480_v17  ;;  %1187 = vperm.xlu0 %2528, %v3480_v17  }
 0x3e4   : > { %v1160_v22 = vsub.f32 %v3477_v15, %v3483_v20  ;;  %1233 = vst.msk [vmem:[#allocation6 + $0x10] sm:$0xff] %vm644_vm3, %v3483_v20  ;;  %1182 = vperm.xlu1 %2529, %v3483_v20   ;;  %v1608_v20 = vld [vmem:[#allocation16 + $0x10] sm:$0xff] }
 0x3e5   : > { %v1168_v59 = vmul.f32 1.442695, %v1161_v21  ;;  %v1609_v21 = vld [vmem:[#allocation16 + $0x18] sm:$0xff] }
 0x3e6   : > { %v1166_v56 = vmul.f32 1.442695, %v1160_v22  ;;  %v2374_v22 = vpack.c.bf16 %v1609_v21, %v1608_v20 }
 0x3e7   : > { %748 = vrot.lane.b32.xlu0 %v3386_v18, %s2940_s26 }
 0x3e8   : > { %739 = vrot.lane.b32.xlu1 %v3386_v18, %s2941_s27 }
 0x3eb   : > { %768 = vrot.lane.b32.xlu0 %v3386_v18, %s2942_s22  ;;  %v1173_v23 = vpop.permute.xlu0 %1172 }
 0x3ec   : > { %758 = vrot.lane.b32.xlu1 %v3386_v18, %s2943_s0  ;;  %v1190_v24 = vsub.f32 %v3432_v44, %v1173_v23 }
 0x3ee   : > { %v1194_v25 = vmul.f32 1.442695, %v1190_v24 }
 0x3f0   : > { %2530 = vpow2.f32 %v1194_v25  ;;  %v1532_v25 = vld [vmem:[#allocation5 + $0x8] sm:$0xff] }
 0x3fa   : > { %v2531_v26 = vpop.eup %2530 }
 0x3fb   : > { %v1210_v27 = vsel %vm1133_vm4, %v2531_v26, 0.0 }
 0x410   : > { %1211 = vadd.xlane.f32.xlu1 %v1210_v27  ;;  %v1531_v27 = vld [vmem:[#allocation5] sm:$0xff] }
 0x45e   : > { %v1178_v28 = vpop.permute.xlu1 %1177 }
 0x45f   : > { %v1191_v29 = vsub.f32 %v978_v55, %v1178_v28 }
 0x461   : > { %v1196_v30 = vmul.f32 1.442695, %v1191_v29 }
 0x462   : > { %v1188_v31 = vpop.permute.xlu0 %1187 }
 0x463   : > { %2532 = vpow2.f32 %v1196_v30  ;;  %v1183_v32 = vpop.permute.xlu1 %1182  ;;  %v1193_v33 = vsub.f32 %v1130_v62, %v1188_v31 }
 0x464   : > { %v1192_v34 = vsub.f32 %v1054_v2, %v1183_v32  ;;  %v1607_v2 = vld [vmem:[#allocation16 + $0x8] sm:$0xff]  ;;  %v1533_v32 = vld [vmem:[#allocation5 + $0x10] sm:$0xff] }
 0x465   : > { %v1200_v35 = vmul.f32 1.442695, %v1193_v33  ;;  %v2371_v3 = vpack.c.bf16 %v1607_v2, %v1606_v63 }
 0x466   : > { %v1198_v36 = vmul.f32 1.442695, %v1192_v34  ;;  %v749_v18 = vpop.permute.xlu0 %748 }
 0x467   : > { %2534 = vpow2.f32 %v1200_v35  ;;  %v740_v37 = vpop.permute.xlu1 %739  ;;  %752 = vst.msk [vmem:[#allocation4 + $0x8] sm:$0xff] %vm626_vm2, %v749_v18 }
 0x468   : > { %2536 = vpow2.f32 %v1198_v36  ;;  %742 = vst.msk [vmem:[#allocation4] sm:$0xff] %vm626_vm2, %v740_v37  ;;  %v1534_v36 = vld [vmem:[#allocation5 + $0x18] sm:$0xff] }
 0x469   : > { %2538 = vpow2.f32 %v1164_v50 }
 0x46a   : > { %v769_v38 = vpop.permute.xlu0 %768  ;;  %2540 = vpow2.f32 %v1162_v51 }
 0x46b   : > { %v759_v39 = vpop.permute.xlu1 %758  ;;  %772 = vst.msk [vmem:[#allocation4 + $0x18] sm:$0xff] %vm626_vm2, %v769_v38  ;;  %2542 = vpow2.f32 %v1166_v56 }
 0x46c   : > { %762 = vst.msk [vmem:[#allocation4 + $0x10] sm:$0xff] %vm626_vm2, %v759_v39  ;;  %2544 = vpow2.f32 %v1168_v59 }
 0x46d   : > { %v2533_v40 = vpop.eup %2532 }
 0x46e   : > { %v1213_v41 = vsel %vm1133_vm4, %v2533_v40, 0.0  ;;  %v1236_v42 = vld [vmem:[#allocation4 + $0x8] sm:$0xff] }
 0x46f   : > { %1214 = vadd.xlane.f32.xlu0 %v1213_v41  ;;  %v1235_v43 = vld [vmem:[#allocation4] sm:$0xff]  ;;  %2316 = vmatpush3.msra.mxu1 %v1236_v42 }
 0x470   : > { %2311 = vmatpush3.msra.mxu0 %v1235_v43  ;;  %2318 = vmatmul.mubr.msk.f32.vlgmr.msra.gmra.mrb[6].mxu1 %vm1133_vm4, %v2533_v40 }
 0x471   : > { %v2535_v44 = vpop.eup %2534  ;;  %2313 = vmatmul.mubr.msk.f32.vlgmr.msra.gmra.mrb[6].mxu0 %vm1133_vm4, %v2531_v26  ;;  %2320 = vmatprep.subr.mxu0 %v2934_v1 }
 0x472   : > { %v2537_v45 = vpop.eup %2536  ;;  %2325 = vmatprep.subr.mxu1 %v2934_v1  ;;  %2322 = vmatprep.mubr.msk.f32.mxu0 %vm2933_vm0, %v2934_v1  ;;  %v1219_v46 = vsel %vm1133_vm4, %v2535_v44, 0.0  ;;  %v1238_v47 = vld [vmem:[#allocation4 + $0x18] sm:$0xff] }
 0x473   : > { %v1216_v48 = vsel %vm1133_vm4, %v2537_v45, 0.0  ;;  %v1237_v49 = vld [vmem:[#allocation4 + $0x10] sm:$0xff]  ;;  %1220 = vadd.xlane.f32.xlu1 %v1219_v46  ;;  %2326 = vmatpush3.msra.mxu1 %v1238_v47  ;;  %v2539_v52 = vpop.eup %2538  ;;  %v1610_v46 = vld [vmem:[#allocation16 + $0x20] sm:$0xff]  ;;  %v1611_v47 = vld [vmem:[#allocation16 + $0x28] sm:$0xff] }
 0x474   : > { %1217 = vadd.xlane.f32.xlu0 %v1216_v48  ;;  %2321 = vmatpush3.msra.mxu0 %v1237_v49  ;;  %v2541_v53 = vpop.eup %2540  ;;  %v1207_v5 = vmul.f32 %v2539_v52, %v1203_v4  ;;  %v2377_v50 = vpack.c.bf16 %v1611_v47, %v1610_v46 }
 0x475   : > { %2327 = vmatprep.mubr.msk.f32.mxu1 %vm2933_vm0, %v2934_v1  ;;  %2323 = vmatmul.mubr.msk.f32.vlgmr.msra.gmra.mrb[8].mxu0 %vm1133_vm4, %v2537_v45  ;;  %v1206_v55 = vmul.f32 %v2541_v53, %v1202_v54  ;;  %v2543_v61 = vpop.eup %2542  ;;  %v1612_v54 = vld [vmem:[#allocation16 + $0x30] sm:$0xff] }
 0x476   : > { %2328 = vmatmul.mubr.msk.f32.vlgmr.msra.gmra.mrb[8].mxu1 %vm1133_vm4, %v2535_v44  ;;  %2370 = vmatprep.subr.bf16.mxu0 %v2932_v0  ;;  %v2545_v62 = vpop.eup %2544  ;;  %v1208_v12 = vmul.f32 %v2543_v61, %v1204_v9 }
 0x477   : > { %2334 = vmatprep.mubr.msk.f32.mxu0 %vm2933_vm0, %v2934_v1  ;;  %2373 = vmatprep.subr.bf16.mxu1 %v2932_v0  ;;  %v1209_v10 = vmul.f32 %v2545_v62, %v1205_v7 }
 0x478   : > { %2341 = vmatprep.mubr.msk.f32.mxu1 %vm2933_vm0, %v2934_v1  ;;  %2372 = vmatpush3.bf16.msra.mxu0 %v2371_v3 }
 0x479   : > { %2376 = vmatprep.subr.bf16.mxu0 %v2932_v0  ;;  %2375 = vmatpush3.bf16.msra.mxu1 %v2374_v22 }
 0x47a   : > { %2379 = vmatprep.subr.bf16.mxu1 %v2932_v0 }
 0x484   : > { %1542 = vperm.xlu1 %2529, %v2539_v52  }
 0x48a   : > { %1537 = vperm.xlu0 %2528, %v2541_v53  }
 0x49d   : > { %v1212_v57 = vpop.xlane.xlu1 %1211 }
 0x49e   : > { %v1222_v58 = vadd.f32 %v1212_v57, %v1206_v55  ;;  %v1613_v55 = vld [vmem:[#allocation16 + $0x38] sm:$0xff] }
 0x49f   : > { %v2380_v59 = vpack.c.bf16 %v1613_v55, %v1612_v54 }
 0x4a0   : > { %1227 = vst.msk [vmem:[#allocation7] sm:$0xff] %vm644_vm3, %v1222_v58 }
 0x4a7   : > { %v1574_v60 = vld [vmem:[#allocation7] sm:$0xff] }
 0x4a8   : > { %1580 = vperm.xlu1 %2529, %v1574_v60  }
 0x4ac   : > { %1547 = vperm.xlu1 %2529, %v2543_v61  }
 0x4b0   : > { %1552 = vperm.xlu1 %2529, %v2545_v62  }
 0x4fc   : > { %v1215_v6 = vpop.xlane.xlu0 %1214 }
 0x4fd   : > { %v1223_v8 = vadd.f32 %v1215_v6, %v1207_v5 }
 0x4ff   : > { %1228 = vst.msk [vmem:[#allocation7 + $0x8] sm:$0xff] %vm644_vm3, %v1223_v8 }
 0x500   : > { %v1221_v11 = vpop.xlane.xlu1 %1220 }
 0x501   : > { %v1225_v13 = vadd.f32 %v1221_v11, %v1209_v10  ;;  %v1218_v14 = vpop.xlane.xlu0 %1217 }
 0x502   : > { %v1224_v15 = vadd.f32 %v1218_v14, %v1208_v12 }
 0x503   : > { %1230 = vst.msk [vmem:[#allocation7 + $0x18] sm:$0xff] %vm644_vm3, %v1225_v13 }
 0x504   : > { %1229 = vst.msk [vmem:[#allocation7 + $0x10] sm:$0xff] %vm644_vm3, %v1224_v15  ;;  %v1543_v23 = vpop.permute.xlu1 %1542 }
 0x505   : > { %v1556_v29 = vmul.f32 %v1543_v23, %v1532_v25 }
 0x506   : > { %v1575_v16 = vld [vmem:[#allocation7 + $0x8] sm:$0xff] }
 0x507   : > { %1585 = vperm.xlu0 %2528, %v1575_v16  }
 0x509   : > { %v1538_v28 = vpop.permute.xlu0 %1537 }
 0x50a   : > { %v1577_v19 = vld [vmem:[#allocation7 + $0x18] sm:$0xff]  ;;  %v1555_v30 = vmul.f32 %v1538_v28, %v1531_v27 }
 0x50b   : > { %v1576_v17 = vld [vmem:[#allocation7 + $0x10] sm:$0xff] }
 0x50c   : > { %1590 = vperm.xlu0 %2528, %v1576_v17  }
 0x510   : > { %1595 = vperm.xlu0 %2528, %v1577_v19  }
 0x527   : > { %v1581_v24 = vpop.permute.xlu1 %1580 }
 0x528   : > { %2546 = vrcp.f32 %v1581_v24 }
 0x52b   : > { %v1548_v26 = vpop.permute.xlu1 %1547 }
 0x52c   : > { %v1557_v0 = vmul.f32 %v1548_v26, %v1533_v32 }
 0x52f   : > { %v1553_v18 = vpop.permute.xlu1 %1552 }
 0x530   : > { %v1558_v39 = vmul.f32 %v1553_v18, %v1534_v36 }
 0x532   : > { %v2547_v48 = vpop.eup %2546 }
 0x543   : > { %v1381_v31 = vpop.f32.mrb[6].mxu1 }
 0x544   : > { %v1308_v33 = vpop.f32.mrb[6].mxu0  ;;  %v1560_v34 = vadd.f32 %v1556_v29, %v1381_v31  ;;  %v2319_v35 = vpop.f32.mrb[7].mxu1 }
 0x545   : > { %v1559_v37 = vadd.f32 %v1555_v30, %v1308_v33  ;;  %v2314_v38 = vpop.f32.mrb[7].mxu0 }
 0x546   : > { %1564 = vst.msk [vmem:[#allocation5 + $0x8] sm:$0xff] %vm626_vm2, %v1560_v34 }
 0x547   : > { %1563 = vst.msk [vmem:[#allocation5] sm:$0xff] %vm626_vm2, %v1559_v37 }
 0x548   : > { %v1454_v40 = vpop.f32.mrb[8].mxu0 }
 0x549   : > { %v1561_v41 = vadd.f32 %v1557_v0, %v1454_v40  ;;  %v1527_v42 = vpop.f32.mrb[8].mxu1  ;;  %v2324_v43 = vpop.f32.mrb[9].mxu0 }
 0x54a   : > { %v1562_v44 = vadd.f32 %v1558_v39, %v1527_v42  ;;  %v2329_v45 = vpop.f32.mrb[9].mxu1 }
 0x54b   : > { %1565 = vst.msk [vmem:[#allocation5 + $0x10] sm:$0xff] %vm626_vm2, %v1561_v41 }
 0x54c   : > { %1566 = vst.msk [vmem:[#allocation5 + $0x18] sm:$0xff] %vm626_vm2, %v1562_v44 }
 0x54d   : > { %v1571_v58 = vld [vmem:[#allocation5 + $0x8] sm:$0xff] }
 0x54e   : > { %v1570_v49 = vld [vmem:[#allocation5] sm:$0xff] }
 0x54f   : > { %v1599_v51 = vmul.f32 %v2547_v48, %v1570_v49 }
 0x551   : > { %2335 = vmatmul.mubr.msk.f32.vlgmr.msra.gmra.mrb[10].mxu0 %vm626_vm2, %v1599_v51 }
 0x552   : > { %2378 = vmatpush3.bf16.msra.mxu0 %v2377_v50  ;;  %2348 = vmatprep.mubr.msk.f32.mxu0 %vm2933_vm0, %v2934_v1  ;;  %v1572_v62 = vld [vmem:[#allocation5 + $0x10] sm:$0xff] }
 0x553   : > { %v1573_v3 = vld [vmem:[#allocation5 + $0x18] sm:$0xff] }
 0x586   : > { %v1586_v52 = vpop.permute.xlu0 %1585 }
 0x587   : > { %2548 = vrcp.f32 %v1586_v52 }
 0x58b   : > { %v1591_v53 = vpop.permute.xlu0 %1590 }
 0x58c   : > { %2550 = vrcp.f32 %v1591_v53 }
 0x58f   : > { %v1596_v56 = vpop.permute.xlu0 %1595 }
 0x590   : > { %2552 = vrcp.f32 %v1596_v56 }
 0x591   : > { %v2549_v57 = vpop.eup %2548 }
 0x592   : > { %v1601_v60 = vmul.f32 %v2549_v57, %v1571_v58 }
 0x594   : > { %2342 = vmatmul.mubr.msk.f32.vlgmr.msra.gmra.mrb[10].mxu1 %vm626_vm2, %v1601_v60 }
 0x595   : > { %2381 = vmatpush3.bf16.msra.mxu1 %v2380_v59  ;;  %2355 = vmatprep.mubr.msk.f32.mxu1 %vm2933_vm0, %v2934_v1 }
 0x596   : > { %v2551_v61 = vpop.eup %2550 }
 0x597   : > { %v1603_v63 = vmul.f32 %v2551_v61, %v1572_v62 }
 0x599   : > { %2349 = vmatmul.mubr.msk.f32.vlgmr.msra.gmra.mrb[12].mxu0 %vm626_vm2, %v1603_v63 }
 0x59a   : > { %v2553_v2 = vpop.eup %2552 }
 0x59b   : > { %v1605_v4 = vmul.f32 %v2553_v2, %v1573_v3 }
 0x59d   : > { %2356 = vmatmul.mubr.msk.f32.vlgmr.msra.gmra.mrb[12].mxu1 %vm626_vm2, %v1605_v4 }
 0x59e   : > { %2797 = shalt.err (!%p2794_p2)
}
 0x59f   : > { %s2798_s15 = scalar_lea.hbm %s3561_s16, 512  ;;  %s2802_s29 = scalar_lea.hbm %s3707_s4, 1024 }
 0x5a0   : > { %p2799_p11 = scmp.ne.s32.totalorder %s3561_s16, %s2798_s15  ;;  %p2803_p12 = scmp.lt.u32.totalorder %s3561_s16, %s3707_s4 }
 0x5a1   : > { %p2804_p13 = scmp.lt.u32.totalorder %s2802_s29, %s2798_s15  ;;  %p2806_p7 = scmp.lt.u32.totalorder %s2798_s15, %s3561_s16 }
 0x5a2   : > { %p2800_p8 = pnand %p2799_p11, %p3708_p0 }
 0x5a3   : > { %p2805_p6 = por %p2804_p13, %p2803_p12 }
 0x5a4   : > { %p2801_p3 = pneg %p2800_p8 }
 0x5a5   : > { %p2807_p10 = por %p2806_p7, %p2805_p6 }
 0x5a7   : > { %p2808_p5 = pnand %p2807_p10, %p2801_p3 }
 0x5a9   : > { %2811 = shalt.err (!%p2808_p5)
}
 0x5aa   : > { %s2945_s22 = smov 128   ;;  %s2946_s0 = smov 8   ;;  %v2220_v13 = vld [vmem:[#allocation17] ss:$0 sm:$0xff] }
 0x5ab   : > { %2409 = dma.vmem_to_hbm [thread:$0]  (%p3708_p0), %s3555_s17, 512, %s3561_s16, %s1924_s9, %s2945_s22, %s2945_s22, %s2946_s0  }
 0x5ac   : > { %s2223_s21 = sshll.u32 %s3706_s6, 7  ;;  %s535_s5 = scalar_lea.vmem [#allocation22], %s3321_s12 }
 0x5ad   : > { %s1938_s25 = sshll.u32 %s535_s5, 4  ;;  %s3709_s16 = sld [smem:[#allocation42_spill]]  ;;  %s3594_s25 = int_to_ptr.vmem [resolvable:$true] %s1938_s25 }
 0x5ae   : > { %s1919_s2 = scalar_lea.sflag [#allocation10], %s3318_s20  ;;  %s2812_s19 = scalar_lea.vmem %s3594_s25, 128 }
 0x5af   : > { %p2813_p4 = scmp.ne.s32.totalorder %s3594_s25, %s2812_s19  ;;  %s2947_s12 = smov [#allocation22]  }
 0x5b0   : > { %s2816_s6 = sshll.u32 %s2947_s12, 4  ;;  %s2817_s6 = int_to_ptr.vmem [resolvable:$false] %s2816_s6 }
 0x5b1   : > { %p2814_p9 = pnand %p2813_p4, %p3708_p0  ;;  %s2818_s3 = scalar_lea.vmem %s2817_s6, 256 }
 0x5b2   : > { %p2819_p2 = scmp.lt.s32.totalorder %s3594_s25, %s2817_s6  ;;  %p2820_p11 = scmp.lt.s32.totalorder %s2818_s3, %s2812_s19 }
 0x5b3   : > { %s3592_s9 = scalar_lea.hbm %s3709_s16, %s2223_s21  ;;  %p2815_p1 = pneg %p2814_p9 }
 0x5b4   : > { %p2821_p8 = por %p2820_p11, %p2819_p2 }
 0x5b6   : > { %p2822_p3 = pnand %p2821_p8, %p2815_p1 }
 0x624   : > { %v1683_v1 = vpop.f32.mrb[10].mxu0 }
 0x625   : > { %v2336_v5 = vpop.f32.mrb[11].mxu0 }
 0x667   : > { %v1756_v6 = vpop.f32.mrb[10].mxu1 }
 0x668   : > { %v1906_v7 = vadd.f32 %v1756_v6, %v1683_v1  ;;  %v2343_v8 = vpop.f32.mrb[11].mxu1 }
 0x66c   : > { %v1829_v9 = vpop.f32.mrb[12].mxu0 }
 0x66d   : > { %v1907_v10 = vadd.f32 %v1906_v7, %v1829_v9  ;;  %v2350_v11 = vpop.f32.mrb[13].mxu0 }
 0x670   : > { %v1902_v12 = vpop.f32.mrb[12].mxu1 }
 0x671   : > { %v1908_v14 = vadd.f32 %v1907_v10, %v1902_v12  ;;  %v2357_v15 = vpop.f32.mrb[13].mxu1 }
 0x673   : > { %v1916_v16 = vadd.f32 %v2220_v13, %v1908_v14 }
 0x675   : > { %1917 = vst.msk [vmem:[%s535_s5] sm:$0xff] %vm552_vm1, %v1916_v16 }
 0x676   : > { %2825 = shalt.err (!%p2822_p3)
}
 0x677   : > { %s2826_s20 = scalar_lea.hbm %s3592_s9, 128  ;;  %s2830_s24 = scalar_lea.hbm %s3709_s16, 256 }
 0x678   : > { %p2827_p12 = scmp.ne.s32.totalorder %s3592_s9, %s2826_s20  ;;  %p2831_p7 = scmp.lt.u32.totalorder %s3592_s9, %s3709_s16 }
 0x679   : > { %p2832_p10 = scmp.lt.u32.totalorder %s2830_s24, %s2826_s20  ;;  %p2834_p4 = scmp.lt.u32.totalorder %s2826_s20, %s3592_s9 }
 0x67a   : > { %p2828_p13 = pnand %p2827_p12, %p3708_p0 }
 0x67b   : > { %p2833_p5 = por %p2832_p10, %p2831_p7 }
 0x67c   : > { %p2829_p6 = pneg %p2828_p13 }
 0x67d   : > { %p2835_p9 = por %p2834_p4, %p2833_p5 }
 0x67f   : > { %p2836_p1 = pnand %p2835_p9, %p2829_p6 }
 0x681   : > { %2839 = shalt.err (!%p2836_p1)
}
 0x682   : > { %2408 = dma.vmem_to_hbm [thread:$0]  (%p3708_p0), %s3594_s25, 128, %s3592_s9, %s1919_s2  }
 0x683 PF: > { %s1968_s27 = sand.u32 1, %s2898_s30   ;;  %p3710_p2 = scmp.ne.s32.totalorder %s3690_s8, 0 }
 0x684   : > { %p3711_p11 = scmp.ge.s32.totalorder %s2918_s14, 2  ;;  %s1969_s22 = scalar_lea.sflag [#allocation10], %s1968_s27 }
 0x686   : > { %p2439_p8 = pnand %p3711_p11, %p3710_p2 }
 0x688   : > { %2889 = dma.done.wait (!%p2439_p8), %s1969_s22, 128  }
 0x689   : > { %2891 = vsyncadd (!%p2439_p8), %s1969_s22, 4294967168  ;;  %s1978_s0 = scalar_lea.sflag [#allocation24], %s1968_s27 }
 0x68a   : > { %2893 = dma.done.wait (!%p2439_p8), %s1978_s0, 512  }
 0x68b   : > { %2895 = vsyncadd (!%p2439_p8), %s1978_s0, 4294966784  ;;  %s37_s14 = sadd.s32 1, %s2918_s14   ;;  %s3712_s18 = sld [smem:[#allocation35_spill]] }
 0x68c   : > { %p34_p3 = scmp.ge.s32.totalorder %s37_s14, 4   ;;  %s3713_s21 = sld [smem:[#allocation34_spill]] }
 0x68d   : > { %s3714_s30 = smov %s2902_s10  ;;  %s3715_s10 = smov %s2906_s11 }
 0x68e   : > { %s3717_s12 = smov %s2914_s13  ;;  %36 = sbr.rel (!%p34_p3) target bundleno = 23 (0x17), region = 177 }
 0x691   : > { %s3716_s11 = smov %s3712_s18 }
 0x692   : > { %s3718_s13 = smov %s3713_s21 }
 0x695   :  { %1983 = vsyncpa [#allocation9], 1 }
 0x696   :  { %1985 = vsyncpa [#allocation9 + $0x1], 1 }
 0x697   :  { %1986 = vsyncpa [#allocation12], 1 }
 0x698   :  { %1988 = vsyncpa [#allocation12 + $0x1], 1 }
 0x699   :  { %1989 = vsyncpa [#allocation15], 1 }
 0x69a   :  { %1990 = vsyncpa [#allocation18], 1 }
 0x69b   :  { %1991 = vsyncpa [#allocation21], 1 }
 0x69c   :  { %1993 = vsyncpa [#allocation21 + $0x1], 1 }
 0x69d   :  { %1994 = vsyncpa [#allocation10], 1 }
 0x69e   :  { %1996 = vsyncpa [#allocation10 + $0x1], 1 }
 0x69f   :  { %1997 = vsyncpa [#allocation24], 1 }
 0x6a0   :  { %1999 = vsyncpa [#allocation24 + $0x1], 1 }

</bundles_post_ra>
